<compile_context>
chip_gen: v5e
topology: v5e:2x2
jax: 0.10.0
libtpu: 0.0.40
codegen_flags: <defaults>
</compile_context>

<pallas_src>
import jax
import jax.numpy as jnp
from jax import lax
from jax.experimental import pallas as pl
from jax.experimental.pallas import tpu as pltpu

MXU_INPUT_DTYPE = jnp.bfloat16        # native MXU rate on v5e/v6e/v7x; accumulation is f32
_VMEM_LIMIT = 32 * 1024 * 1024        # explicit scoped-VMEM cap (safe on every generation)
_BN_EPS = 1e-5


def _ru(x, m):
    return ((x + m - 1) // m) * m


def _pick_rows(hw, target=512):
    """Return (row_tile, padded_rows).

    Prefer an exact multiple-of-8 divisor of `hw` in [64, target] (no padding); otherwise
    pad to a multiple of a bounded tile.  Never falls back to a full-extent block (v7x VMEM)
    and never drops to 8-row tiles on awkward factors.
    """
    if hw % 8 == 0:
        t = (min(target, hw) // 8) * 8
        for cand in range(t, 63, -8):
            if hw % cand == 0:
                return cand, hw
    tile = min(target, _ru(hw, 8))
    return tile, _ru(hw, tile)


# ----------------------------- bilinear upsample (in-kernel gather) -----------------------------

def _interp_coords(in_size, out_size):
    # PyTorch F.upsample(mode='bilinear', align_corners=False) source coordinates.
    scale = in_size / out_size
    src = (jnp.arange(out_size, dtype=jnp.float32) + 0.5) * scale - 0.5
    src = jnp.maximum(src, 0.0)
    lo = jnp.floor(src).astype(jnp.int32)
    hi = jnp.minimum(lo + 1, in_size - 1)
    lam = src - lo.astype(jnp.float32)
    return lo, hi, lam


def _interp_matrix(in_size, out_size):
    # Dense (out, in) matrix with the two bilinear taps per output position; the W-axis
    # gather+lerp becomes one small MXU matmul inside the kernel.
    lo, hi, lam = _interp_coords(in_size, out_size)
    m_lo = jax.nn.one_hot(lo, in_size, dtype=jnp.float32) * (1.0 - lam)[:, None]
    m_hi = jax.nn.one_hot(hi, in_size, dtype=jnp.float32) * lam[:, None]
    return m_lo + m_hi


def _bilinear_kernel(loh_ref, hih_ref, lamh_ref, xlo_ref, xhi_ref, aw_ref, o_ref):
    # xlo/xhi: the two source rows (lo_h[oh], hi_h[oh]) selected by the scalar-prefetched
    # index maps -- corners are never materialized in HBM.
    oh = pl.program_id(1)
    lam = lamh_ref[oh]                                        # f32 scalar from SMEM
    blend = xlo_ref[0, 0] * (1.0 - lam) + xhi_ref[0, 0] * lam  # (Wl, C) f32, H-axis lerp
    row = jnp.dot(aw_ref[...], blend,                          # (out_w, C): W-axis gather+lerp
                  preferred_element_type=jnp.float32)
    o_ref[0, 0] = row.astype(o_ref.dtype)                      # emit bf16 directly


def bilinear_upsample(x, out_h, out_w, out_dtype=MXU_INPUT_DTYPE):
    """Bilinear resize of NHWC f32 input -> (N, out_h, out_w, C) in `out_dtype`."""
    N, H, W, C = x.shape
    if (H, W) == (out_h, out_w):
        return x.astype(out_dtype)
    lo_h, hi_h, lam_h = _interp_coords(H, out_h)
    a_w = _interp_matrix(W, out_w)                             # (out_w, W), tiny

    return pl.pallas_call(
        _bilinear_kernel,
        out_shape=jax.ShapeDtypeStruct((N, out_h, out_w, C), out_dtype),
        grid_spec=pltpu.PrefetchScalarGridSpec(
            num_scalar_prefetch=2,                             # lo_h, hi_h (int32)
            grid=(N, out_h),
            in_specs=[
                pl.BlockSpec(memory_space=pltpu.MemorySpace.SMEM),              # lam_h
                pl.BlockSpec((1, 1, W, C), lambda n, oh, loh, hih: (n, loh[oh], 0, 0)),
                pl.BlockSpec((1, 1, W, C), lambda n, oh, loh, hih: (n, hih[oh], 0, 0)),
                pl.BlockSpec((out_w, W), lambda n, oh, loh, hih: (0, 0)),
            ],
            out_specs=pl.BlockSpec((1, 1, out_w, C),
                                   lambda n, oh, loh, hih: (n, oh, 0, 0))),
        compiler_params=pltpu.CompilerParams(
            dimension_semantics=("parallel", "parallel")),
    )(lo_h, hi_h, lam_h, x, x, a_w)


# ----------------------------- split-weight 1x1 conv + fused BN stats -----------------------------

def _conv_stats_kernel(up_ref, high_ref, wu_ref, wh_ref, y_ref, sum_ref, sq_ref):
    # Stats outputs are resident across the row-tile (innermost, "arbitrary") axis.
    @pl.when(pl.program_id(2) == 0)
    def _():
        sum_ref[...] = jnp.zeros_like(sum_ref)
        sq_ref[...] = jnp.zeros_like(sq_ref)

    acc = jnp.dot(up_ref[0], wu_ref[...], preferred_element_type=jnp.float32)
    acc = acc + jnp.dot(high_ref[0], wh_ref[...], preferred_element_type=jnp.float32)
    y_ref[0] = acc
    sum_ref[0] += jnp.sum(acc, axis=0, keepdims=True)
    sq_ref[0] += jnp.sum(acc * acc, axis=0, keepdims=True)


def conv1x1_with_stats(up, high, w_up, w_high, tm, tn):
    """y = up @ w_up + high @ w_high plus per-sample channel sum / sum-of-squares.

    up/high: (N, HWp, C) bf16; w_*: (C, Coutp) bf16.
    Returns y (N, HWp, Coutp) f32, sums (N, 1, Coutp) f32, sqs (N, 1, Coutp) f32.
    """
    N, HWp, C = up.shape
    Coutp = w_up.shape[1]
    grid = (N, Coutp // tn, HWp // tm)
    flops = 4 * N * HWp * C * Coutp
    bytes_accessed = (2 * N * HWp * C + 2 * C * Coutp) * 2 \
        + (N * HWp * Coutp + 2 * N * Coutp) * 4

    return pl.pallas_call(
        _conv_stats_kernel,
        out_shape=(jax.ShapeDtypeStruct((N, HWp, Coutp), jnp.float32),
                   jax.ShapeDtypeStruct((N, 1, Coutp), jnp.float32),
                   jax.ShapeDtypeStruct((N, 1, Coutp), jnp.float32)),
        grid_spec=pltpu.PrefetchScalarGridSpec(
            num_scalar_prefetch=0,
            grid=grid,
            in_specs=[pl.BlockSpec((1, tm, C), lambda n, j, i: (n, i, 0)),
                      pl.BlockSpec((1, tm, C), lambda n, j, i: (n, i, 0)),
                      pl.BlockSpec((C, tn), lambda n, j, i: (0, j)),
                      pl.BlockSpec((C, tn), lambda n, j, i: (0, j))],
            out_specs=(pl.BlockSpec((1, tm, tn), lambda n, j, i: (n, i, j)),
                       pl.BlockSpec((1, 1, tn), lambda n, j, i: (n, 0, j)),
                       pl.BlockSpec((1, 1, tn), lambda n, j, i: (n, 0, j)))),
        compiler_params=pltpu.CompilerParams(
            dimension_semantics=("parallel", "parallel", "arbitrary"),
            vmem_limit_bytes=_VMEM_LIMIT),
        cost_estimate=pl.CostEstimate(flops=flops, transcendentals=0,
                                      bytes_accessed=bytes_accessed),
    )(up, high, w_up, w_high)


# ----------------------------- fused BN + avg-pool gate (single FMA) -----------------------------

def _bn_gate_kernel(y_ref, a_ref, b_ref, o_ref):
    # out = (1 + gp) * (y*scale + shift) = y*a + b  with per-(n,c) a,b broadcast from (1,1,C).
    o_ref[...] = y_ref[...] * a_ref[...] + b_ref[...]


def bn_gate(y, a, b, tm):
    N, HWp, Coutp = y.shape
    return pl.pallas_call(
        _bn_gate_kernel,
        out_shape=jax.ShapeDtypeStruct((N, HWp, Coutp), jnp.float32),
        grid_spec=pltpu.PrefetchScalarGridSpec(
            num_scalar_prefetch=0,
            grid=(N, HWp // tm),
            in_specs=[pl.BlockSpec((1, tm, Coutp), lambda n, i: (n, i, 0)),
                      pl.BlockSpec((1, 1, Coutp), lambda n, i: (n, 0, 0)),
                      pl.BlockSpec((1, 1, Coutp), lambda n, i: (n, 0, 0))],
            out_specs=pl.BlockSpec((1, tm, Coutp), lambda n, i: (n, i, 0))),
        compiler_params=pltpu.CompilerParams(
            dimension_semantics=("parallel", "parallel"),
            vmem_limit_bytes=_VMEM_LIMIT),
    )(y, a, b)


# ----------------------------- GAU forward -----------------------------

def gau_forward(params, input_low, input_high):
    """GAU.forward.  Inputs/outputs are NCHW (PyTorch layout)."""
    low = jnp.transpose(input_low, (0, 2, 3, 1)).astype(jnp.float32)          # tiny, keep f32
    # Cast folded into the layout change: no standalone full-tensor cast pass.
    high = jnp.transpose(input_high, (0, 2, 3, 1)).astype(MXU_INPUT_DTYPE)    # NHWC bf16
    N, Hh, Wh, C = high.shape
    HW = Hh * Wh
    Cout = params["conv_w"].shape[1]

    # upsample_low = F.upsample(input_low, high_size, mode='bilinear'); bf16 out for the MXU.
    up = bilinear_upsample(low, Hh, Wh)                                       # (N,Hh,Wh,C) bf16

    # Row tiling: target 512 rows; zero-pad awkward HW (zero rows -> zero conv output, so
    # the fused BN stats stay exact; padded rows are sliced off at the end).
    tm, HWp = _pick_rows(HW, target=512)
    up2 = up.reshape(N, HW, C)
    high2 = high.reshape(N, HW, C)
    if HWp != HW:
        up2 = jnp.pad(up2, ((0, 0), (0, HWp - HW), (0, 0)))
        high2 = jnp.pad(high2, ((0, 0), (0, HWp - HW), (0, 0)))

    # Split conv weight: y = up @ W[:C] + high @ W[C:]  (no channel concat materialized).
    tn = min(_ru(Cout, 128), 512)
    Coutp = _ru(Cout, tn)
    w = params["conv_w"].astype(MXU_INPUT_DTYPE)
    w_up, w_high = w[:C], w[C:]
    if Coutp != Cout:
        w_up = jnp.pad(w_up, ((0, 0), (0, Coutp - Cout)))
        w_high = jnp.pad(w_high, ((0, 0), (0, Coutp - Cout)))

    y, sums, sqs = conv1x1_with_stats(up2, high2, w_up, w_high, tm, tn)

    # BatchNorm2d (training-mode batch stats, eps=1e-5) + avg-pool gate, folded into
    # per-(n,c) FMA coefficients (tiny (N,C) glue):
    #   bn(y) = y*scale + shift ; gp = mean_hw bn(y) ; out = (1+gp)*bn(y) = y*a + b
    m = float(N * HW)
    s = sums[:, 0, :Cout]                                      # (N, Cout)
    q = sqs[:, 0, :Cout]
    mean = jnp.sum(s, axis=0) / m
    var = jnp.maximum(jnp.sum(q, axis=0) / m - mean * mean, 0.0)   # clamp f32 cancellation
    scale = params["bn_gamma"] * lax.rsqrt(var + _BN_EPS)
    shift = params["bn_beta"] - mean * scale
    gp = (s / HW) * scale[None, :] + shift[None, :]            # pooled bn(y), (N, Cout)
    a = scale[None, :] * (1.0 + gp)
    b = shift[None, :] * (1.0 + gp)
    if Coutp != Cout:
        a = jnp.pad(a, ((0, 0), (0, Coutp - Cout)))
        b = jnp.pad(b, ((0, 0), (0, Coutp - Cout)))

    out = bn_gate(y, a.reshape(N, 1, Coutp), b.reshape(N, 1, Coutp), tm)
    out = out[:, :HW, :Cout].reshape(N, Hh, Wh, Cout)
    return jnp.transpose(out, (0, 3, 1, 2))                    # NHWC -> NCHW


# ----------------------------- deterministic parameter init -----------------------------

def init_gau_params(key, in_size, out_size):
    # nn.Conv2d(in_size*2, out_size, kernel_size=1, bias=False): weight stored directly in
    # matmul layout (2*in, out) == torch_weight.reshape(out, -1).T
    fan_in = 2 * in_size
    w = jax.random.normal(key, (fan_in, out_size), jnp.float32) * (2.0 / fan_in) ** 0.5
    # nn.BatchNorm2d default init: weight=1, bias=0.  The reference module declares
    # BatchNorm2d(in_size) but applies it to the conv output (out_size channels); this only
    # type-checks when in_size == out_size, which is how GAU is used.
    return {"conv_w": w,
            "bn_gamma": jnp.ones((out_size,), jnp.float32),
            "bn_beta": jnp.zeros((out_size,), jnp.float32)}


# ----------------------------- main -----------------------------

if __name__ == "__main__":
    key = jax.random.PRNGKey(0)
    k_w, k_low, k_high = jax.random.split(key, 3)

    N, C = 2, 128            # in_size = out_size = 128 (lane-aligned channels)
    Hl, Wl = 8, 8            # low-resolution input
    Hh, Wh = 16, 16          # high-resolution input (output size)

    params = init_gau_params(k_w, in_size=C, out_size=C)
    input_low = jax.random.normal(k_low, (N, C, Hl, Wl), jnp.float32)    # NCHW
    input_high = jax.random.normal(k_high, (N, C, Hh, Wh), jnp.float32)  # NCHW

    fwd = jax.jit(gau_forward)
    out = fwd(params, input_low, input_high)
    out = jax.block_until_ready(out)

    assert out.shape == (N, C, Hh, Wh), out.shape
    assert bool(jnp.all(jnp.isfinite(out)))
    print("KERNEL_OK")
</pallas_src>

<mosaic_0001>
module attributes {stable_mosaic.version = 11 : i64} {
  func.func @_conv_stats_kernel(%arg0: i32, %arg1: i32, %arg2: i32, %arg3: memref<1x256x128xbf16, #tpu.memory_space<vmem>>, %arg4: memref<1x256x128xbf16, #tpu.memory_space<vmem>>, %arg5: memref<128x128xbf16, #tpu.memory_space<vmem>>, %arg6: memref<128x128xbf16, #tpu.memory_space<vmem>>, %arg7: memref<1x256x128xf32, #tpu.memory_space<vmem>>, %arg8: memref<1x1x128xf32, #tpu.memory_space<vmem>>, %arg9: memref<1x1x128xf32, #tpu.memory_space<vmem>>) attributes {dimension_semantics = [#tpu.dimension_semantics<parallel>, #tpu.dimension_semantics<parallel>, #tpu.dimension_semantics<arbitrary>], iteration_bounds = array<i64: 2, 1, 1>, scalar_prefetch = 0 : i64, scratch_operands = 0 : i64, tpu.core_type = #tpu.core_type<tc>, window_params = [{transform_indices = @transform_0, window_bounds = array<i64: 1, 256, 128>}, {transform_indices = @transform_1, window_bounds = array<i64: 1, 256, 128>}, {transform_indices = @transform_2, window_bounds = array<i64: 128, 128>}, {transform_indices = @transform_3, window_bounds = array<i64: 128, 128>}, {transform_indices = @transform_4, window_bounds = array<i64: 1, 256, 128>}, {transform_indices = @transform_5, window_bounds = array<i64: 1, 1, 128>}, {transform_indices = @transform_6, window_bounds = array<i64: 1, 1, 128>}]} {
    %c0_i32 = arith.constant 0 : i32
    %0 = arith.cmpi eq, %arg2, %c0_i32 : i32
    %1 = arith.extui %0 : i1 to i32
    %c0_i32_0 = arith.constant 0 : i32
    %2 = arith.cmpi ne, %1, %c0_i32_0 : i32
    scf.if %2 {
      %cst_28 = arith.constant 0.000000e+00 : f32
      %32 = vector.broadcast %cst_28 : f32 to vector<1x1x128xf32>
      %c0_29 = arith.constant 0 : index
      %c0_30 = arith.constant 0 : index
      %c0_31 = arith.constant 0 : index
      %33 = vector.load %arg8[%c0_29, %c0_30, %c0_31] : memref<1x1x128xf32, #tpu.memory_space<vmem>>, vector<1x1x128xf32>
      tpu.vector_store %arg8[%c0_29, %c0_30, %c0_31], %32 {strides = array<i32>} : memref<1x1x128xf32, #tpu.memory_space<vmem>>, vector<1x1x128xf32>,
      %cst_32 = arith.constant 0.000000e+00 : f32
      %34 = vector.broadcast %cst_32 : f32 to vector<1x1x128xf32>
      %c0_33 = arith.constant 0 : index
      %c0_34 = arith.constant 0 : index
      %c0_35 = arith.constant 0 : index
      %35 = vector.load %arg9[%c0_33, %c0_34, %c0_35] : memref<1x1x128xf32, #tpu.memory_space<vmem>>, vector<1x1x128xf32>
      tpu.vector_store %arg9[%c0_33, %c0_34, %c0_35], %34 {strides = array<i32>} : memref<1x1x128xf32, #tpu.memory_space<vmem>>, vector<1x1x128xf32>,
    } else {
    }
    %c0 = arith.constant 0 : index
    %c0_1 = arith.constant 0 : index
    %c0_2 = arith.constant 0 : index
    %3 = vector.load %arg3[%c0, %c0_1, %c0_2] : memref<1x256x128xbf16, #tpu.memory_space<vmem>>, vector<1x256x128xbf16>
    %4 = vector.shape_cast %3 : vector<1x256x128xbf16> to vector<256x128xbf16>
    %c0_3 = arith.constant 0 : index
    %c0_4 = arith.constant 0 : index
    %5 = vector.load %arg5[%c0_3, %c0_4] : memref<128x128xbf16, #tpu.memory_space<vmem>>, vector<128x128xbf16>
    %cst = arith.constant dense<0.000000e+00> : vector<256x128xf32>
    %6 = tpu.matmul %4, %5, %cst {dimension_numbers = #tpu.dot_dimension_numbers<[1], [0], [0], [1], [0, 0, 1, 1], [], []>} : vector<256x128xbf16>, vector<128x128xbf16>, vector<256x128xf32> -> vector<256x128xf32>
    %c0_5 = arith.constant 0 : index
    %c0_6 = arith.constant 0 : index
    %c0_7 = arith.constant 0 : index
    %7 = vector.load %arg4[%c0_5, %c0_6, %c0_7] : memref<1x256x128xbf16, #tpu.memory_space<vmem>>, vector<1x256x128xbf16>
    %8 = vector.shape_cast %7 : vector<1x256x128xbf16> to vector<256x128xbf16>
    %c0_8 = arith.constant 0 : index
    %c0_9 = arith.constant 0 : index
    %9 = vector.load %arg6[%c0_8, %c0_9] : memref<128x128xbf16, #tpu.memory_space<vmem>>, vector<128x128xbf16>
    %cst_10 = arith.constant dense<0.000000e+00> : vector<256x128xf32>
    %10 = tpu.matmul %8, %9, %cst_10 {dimension_numbers = #tpu.dot_dimension_numbers<[1], [0], [0], [1], [0, 0, 1, 1], [], []>} : vector<256x128xbf16>, vector<128x128xbf16>, vector<256x128xf32> -> vector<256x128xf32>
    %11 = arith.addf %6, %10 : vector<256x128xf32>
    %c0_11 = arith.constant 0 : index
    %c0_12 = arith.constant 0 : index
    %c0_13 = arith.constant 0 : index
    %12 = vector.load %arg7[%c0_11, %c0_12, %c0_13] : memref<1x256x128xf32, #tpu.memory_space<vmem>>, vector<1x256x128xf32>
    %13 = vector.shape_cast %12 : vector<1x256x128xf32> to vector<256x128xf32>
    %14 = vector.shape_cast %11 : vector<256x128xf32> to vector<1x256x128xf32>
    tpu.vector_store %arg7[%c0_11, %c0_12, %c0_13], %14 {strides = array<i32>} : memref<1x256x128xf32, #tpu.memory_space<vmem>>, vector<1x256x128xf32>,
    %c0_14 = arith.constant 0 : index
    %c0_15 = arith.constant 0 : index
    %c0_16 = arith.constant 0 : index
    %15 = vector.load %arg8[%c0_14, %c0_15, %c0_16] : memref<1x1x128xf32, #tpu.memory_space<vmem>>, vector<1x1x128xf32>
    %16 = vector.shape_cast %15 : vector<1x1x128xf32> to vector<1x128xf32>
    %cst_17 = arith.constant dense<0.000000e+00> : vector<128xf32>
    %17 = vector.multi_reduction <add>, %11, %cst_17 [0] : vector<256x128xf32> to vector<128xf32>
    %18 = vector.shape_cast %17 : vector<128xf32> to vector<1x128xf32>
    %19 = arith.addf %16, %18 : vector<1x128xf32>
    %c0_18 = arith.constant 0 : index
    %c0_19 = arith.constant 0 : index
    %c0_20 = arith.constant 0 : index
    %20 = vector.load %arg8[%c0_18, %c0_19, %c0_20] : memref<1x1x128xf32, #tpu.memory_space<vmem>>, vector<1x1x128xf32>
    %21 = vector.shape_cast %20 : vector<1x1x128xf32> to vector<1x128xf32>
    %22 = vector.shape_cast %19 : vector<1x128xf32> to vector<1x1x128xf32>
    tpu.vector_store %arg8[%c0_18, %c0_19, %c0_20], %22 {strides = array<i32>} : memref<1x1x128xf32, #tpu.memory_space<vmem>>, vector<1x1x128xf32>,
    %c0_21 = arith.constant 0 : index
    %c0_22 = arith.constant 0 : index
    %c0_23 = arith.constant 0 : index
    %23 = vector.load %arg9[%c0_21, %c0_22, %c0_23] : memref<1x1x128xf32, #tpu.memory_space<vmem>>, vector<1x1x128xf32>
    %24 = vector.shape_cast %23 : vector<1x1x128xf32> to vector<1x128xf32>
    %25 = arith.mulf %11, %11 : vector<256x128xf32>
    %cst_24 = arith.constant dense<0.000000e+00> : vector<128xf32>
    %26 = vector.multi_reduction <add>, %25, %cst_24 [0] : vector<256x128xf32> to vector<128xf32>
    %27 = vector.shape_cast %26 : vector<128xf32> to vector<1x128xf32>
    %28 = arith.addf %24, %27 : vector<1x128xf32>
    %c0_25 = arith.constant 0 : index
    %c0_26 = arith.constant 0 : index
    %c0_27 = arith.constant 0 : index
    %29 = vector.load %arg9[%c0_25, %c0_26, %c0_27] : memref<1x1x128xf32, #tpu.memory_space<vmem>>, vector<1x1x128xf32>
    %30 = vector.shape_cast %29 : vector<1x1x128xf32> to vector<1x128xf32>
    %31 = vector.shape_cast %28 : vector<1x128xf32> to vector<1x1x128xf32>
    tpu.vector_store %arg9[%c0_25, %c0_26, %c0_27], %31 {strides = array<i32>} : memref<1x1x128xf32, #tpu.memory_space<vmem>>, vector<1x1x128xf32>,
    return
  }
  func.func @transform_0(%arg0: i32, %arg1: i32, %arg2: i32) -> (i32, i32, i32) {
    %c0_i32 = arith.constant 0 : i32
    %c0_i32_0 = arith.constant 0 : i32
    return %arg0, %arg2, %c0_i32 : i32, i32, i32
  }
  func.func @transform_1(%arg0: i32, %arg1: i32, %arg2: i32) -> (i32, i32, i32) {
    %c0_i32 = arith.constant 0 : i32
    %c0_i32_0 = arith.constant 0 : i32
    return %arg0, %arg2, %c0_i32 : i32, i32, i32
  }
  func.func @transform_2(%arg0: i32, %arg1: i32, %arg2: i32) -> (i32, i32) {
    %c0_i32 = arith.constant 0 : i32
    %c0_i32_0 = arith.constant 0 : i32
    return %c0_i32, %arg1 : i32, i32
  }
  func.func @transform_3(%arg0: i32, %arg1: i32, %arg2: i32) -> (i32, i32) {
    %c0_i32 = arith.constant 0 : i32
    %c0_i32_0 = arith.constant 0 : i32
    return %c0_i32, %arg1 : i32, i32
  }
  func.func @transform_4(%arg0: i32, %arg1: i32, %arg2: i32) -> (i32, i32, i32) {
    %c0_i32 = arith.constant 0 : i32
    return %arg0, %arg2, %arg1 : i32, i32, i32
  }
  func.func @transform_5(%arg0: i32, %arg1: i32, %arg2: i32) -> (i32, i32, i32) {
    %c0_i32 = arith.constant 0 : i32
    %c0_i32_0 = arith.constant 0 : i32
    return %arg0, %c0_i32, %arg1 : i32, i32, i32
  }
  func.func @transform_6(%arg0: i32, %arg1: i32, %arg2: i32) -> (i32, i32, i32) {
    %c0_i32 = arith.constant 0 : i32
    %c0_i32_0 = arith.constant 0 : i32
    return %arg0, %c0_i32, %arg1 : i32, i32, i32
  }
}

module attributes {stable_mosaic.version = 11 : i64} {
  func.func @_bilinear_kernel(%arg0: i32, %arg1: i32, %arg2: memref<16xi32, #tpu.memory_space<smem>>, %arg3: memref<16xi32, #tpu.memory_space<smem>>, %arg4: memref<16xf32, #tpu.memory_space<smem>>, %arg5: memref<1x1x8x128xf32, #tpu.memory_space<vmem>>, %arg6: memref<1x1x8x128xf32, #tpu.memory_space<vmem>>, %arg7: memref<16x8xf32, #tpu.memory_space<vmem>>, %arg8: memref<1x1x16x128xbf16, #tpu.memory_space<vmem>>) attributes {dimension_semantics = [#tpu.dimension_semantics<parallel>, #tpu.dimension_semantics<parallel>], iteration_bounds = array<i64: 2, 16>, scalar_prefetch = 2 : i64, scratch_operands = 0 : i64, tpu.core_type = #tpu.core_type<tc>, window_params = [{transform_indices = @transform_0, window_bounds = array<i64: 16>}, {transform_indices = @transform_1, window_bounds = array<i64: 1, 1, 8, 128>}, {transform_indices = @transform_2, window_bounds = array<i64: 1, 1, 8, 128>}, {pipeline_mode = #tpu.pipeline_mode<synchronous>, transform_indices = @transform_3, window_bounds = array<i64: 16, 8>}, {transform_indices = @transform_4, window_bounds = array<i64: 1, 1, 16, 128>}]} {
    %0 = arith.index_cast %arg1 : i32 to index
    %1 = memref.load %arg4[%0] : memref<16xf32, #tpu.memory_space<smem>>
    %c0 = arith.constant 0 : index
    %c0_0 = arith.constant 0 : index
    %c0_1 = arith.constant 0 : index
    %c0_2 = arith.constant 0 : index
    %2 = vector.load %arg5[%c0, %c0_0, %c0_1, %c0_2] : memref<1x1x8x128xf32, #tpu.memory_space<vmem>>, vector<1x1x8x128xf32>
    %3 = vector.shape_cast %2 : vector<1x1x8x128xf32> to vector<8x128xf32>
    %cst = arith.constant 1.000000e+00 : f32
    %4 = arith.subf %cst, %1 : f32
    %5 = vector.broadcast %4 : f32 to vector<8x128xf32>
    %6 = arith.mulf %3, %5 : vector<8x128xf32>
    %c0_3 = arith.constant 0 : index
    %c0_4 = arith.constant 0 : index
    %c0_5 = arith.constant 0 : index
    %c0_6 = arith.constant 0 : index
    %7 = vector.load %arg6[%c0_3, %c0_4, %c0_5, %c0_6] : memref<1x1x8x128xf32, #tpu.memory_space<vmem>>, vector<1x1x8x128xf32>
    %8 = vector.shape_cast %7 : vector<1x1x8x128xf32> to vector<8x128xf32>
    %9 = vector.broadcast %1 : f32 to vector<8x128xf32>
    %10 = arith.mulf %8, %9 : vector<8x128xf32>
    %11 = arith.addf %6, %10 : vector<8x128xf32>
    %c0_7 = arith.constant 0 : index
    %c0_8 = arith.constant 0 : index
    %12 = vector.load %arg7[%c0_7, %c0_8] : memref<16x8xf32, #tpu.memory_space<vmem>>, vector<16x8xf32>
    %cst_9 = arith.constant dense<0.000000e+00> : vector<16x128xf32>
    %13 = tpu.matmul %12, %11, %cst_9 {dimension_numbers = #tpu.dot_dimension_numbers<[1], [0], [0], [1], [0, 0, 1, 1], [], []>} : vector<16x8xf32>, vector<8x128xf32>, vector<16x128xf32> -> vector<16x128xf32>
    %14 = arith.truncf %13 : vector<16x128xf32> to vector<16x128xbf16>
    %c0_10 = arith.constant 0 : index
    %c0_11 = arith.constant 0 : index
    %c0_12 = arith.constant 0 : index
    %c0_13 = arith.constant 0 : index
    %15 = vector.load %arg8[%c0_10, %c0_11, %c0_12, %c0_13] : memref<1x1x16x128xbf16, #tpu.memory_space<vmem>>, vector<1x1x16x128xbf16>
    %16 = vector.shape_cast %15 : vector<1x1x16x128xbf16> to vector<16x128xbf16>
    %17 = vector.shape_cast %14 : vector<16x128xbf16> to vector<1x1x16x128xbf16>
    tpu.vector_store %arg8[%c0_10, %c0_11, %c0_12, %c0_13], %17 {strides = array<i32>} : memref<1x1x16x128xbf16, #tpu.memory_space<vmem>>, vector<1x1x16x128xbf16>,
    return
  }
  func.func @transform_0(%arg0: i32, %arg1: i32, %arg2: memref<16xi32, #tpu.memory_space<smem>>, %arg3: memref<16xi32, #tpu.memory_space<smem>>) -> i32 {
    %c0_i32 = arith.constant 0 : i32
    %c0_i32_0 = arith.constant 0 : i32
    return %c0_i32 : i32
  }
  func.func @transform_1(%arg0: i32, %arg1: i32, %arg2: memref<16xi32, #tpu.memory_space<smem>>, %arg3: memref<16xi32, #tpu.memory_space<smem>>) -> (i32, i32, i32, i32) {
    %0 = arith.index_cast %arg1 : i32 to index
    %1 = memref.load %arg2[%0] : memref<16xi32, #tpu.memory_space<smem>>
    %c0_i32 = arith.constant 0 : i32
    %c0_i32_0 = arith.constant 0 : i32
    %c0_i32_1 = arith.constant 0 : i32
    return %arg0, %1, %c0_i32, %c0_i32_0 : i32, i32, i32, i32
  }
  func.func @transform_2(%arg0: i32, %arg1: i32, %arg2: memref<16xi32, #tpu.memory_space<smem>>, %arg3: memref<16xi32, #tpu.memory_space<smem>>) -> (i32, i32, i32, i32) {
    %0 = arith.index_cast %arg1 : i32 to index
    %1 = memref.load %arg3[%0] : memref<16xi32, #tpu.memory_space<smem>>
    %c0_i32 = arith.constant 0 : i32
    %c0_i32_0 = arith.constant 0 : i32
    %c0_i32_1 = arith.constant 0 : i32
    return %arg0, %1, %c0_i32, %c0_i32_0 : i32, i32, i32, i32
  }
  func.func @transform_3(%arg0: i32, %arg1: i32, %arg2: memref<16xi32, #tpu.memory_space<smem>>, %arg3: memref<16xi32, #tpu.memory_space<smem>>) -> (i32, i32) {
    %c0_i32 = arith.constant 0 : i32
    %c0_i32_0 = arith.constant 0 : i32
    %c0_i32_1 = arith.constant 0 : i32
    return %c0_i32, %c0_i32_0 : i32, i32
  }
  func.func @transform_4(%arg0: i32, %arg1: i32, %arg2: memref<16xi32, #tpu.memory_space<smem>>, %arg3: memref<16xi32, #tpu.memory_space<smem>>) -> (i32, i32, i32, i32) {
    %c0_i32 = arith.constant 0 : i32
    %c0_i32_0 = arith.constant 0 : i32
    %c0_i32_1 = arith.constant 0 : i32
    return %arg0, %arg1, %c0_i32, %c0_i32_0 : i32, i32, i32, i32
  }
}

module attributes {stable_mosaic.version = 11 : i64} {
  func.func @_bn_gate_kernel(%arg0: i32, %arg1: i32, %arg2: memref<1x256x128xf32, #tpu.memory_space<vmem>>, %arg3: memref<1x1x128xf32, #tpu.memory_space<vmem>>, %arg4: memref<1x1x128xf32, #tpu.memory_space<vmem>>, %arg5: memref<1x256x128xf32, #tpu.memory_space<vmem>>) attributes {dimension_semantics = [#tpu.dimension_semantics<parallel>, #tpu.dimension_semantics<parallel>], iteration_bounds = array<i64: 2, 1>, scalar_prefetch = 0 : i64, scratch_operands = 0 : i64, tpu.core_type = #tpu.core_type<tc>, window_params = [{transform_indices = @transform_0, window_bounds = array<i64: 1, 256, 128>}, {transform_indices = @transform_1, window_bounds = array<i64: 1, 1, 128>}, {transform_indices = @transform_2, window_bounds = array<i64: 1, 1, 128>}, {transform_indices = @transform_3, window_bounds = array<i64: 1, 256, 128>}]} {
    %c0 = arith.constant 0 : index
    %c0_0 = arith.constant 0 : index
    %c0_1 = arith.constant 0 : index
    %0 = vector.load %arg2[%c0, %c0_0, %c0_1] : memref<1x256x128xf32, #tpu.memory_space<vmem>>, vector<1x256x128xf32>
    %c0_2 = arith.constant 0 : index
    %c0_3 = arith.constant 0 : index
    %c0_4 = arith.constant 0 : index
    %1 = vector.load %arg3[%c0_2, %c0_3, %c0_4] : memref<1x1x128xf32, #tpu.memory_space<vmem>>, vector<1x1x128xf32>
    %2 = vector.broadcast %1 : vector<1x1x128xf32> to vector<1x256x128xf32>
    %3 = arith.mulf %0, %2 : vector<1x256x128xf32>
    %c0_5 = arith.constant 0 : index
    %c0_6 = arith.constant 0 : index
    %c0_7 = arith.constant 0 : index
    %4 = vector.load %arg4[%c0_5, %c0_6, %c0_7] : memref<1x1x128xf32, #tpu.memory_space<vmem>>, vector<1x1x128xf32>
    %5 = vector.broadcast %4 : vector<1x1x128xf32> to vector<1x256x128xf32>
    %6 = arith.addf %3, %5 : vector<1x256x128xf32>
    %c0_8 = arith.constant 0 : index
    %c0_9 = arith.constant 0 : index
    %c0_10 = arith.constant 0 : index
    %7 = vector.load %arg5[%c0_8, %c0_9, %c0_10] : memref<1x256x128xf32, #tpu.memory_space<vmem>>, vector<1x256x128xf32>
    tpu.vector_store %arg5[%c0_8, %c0_9, %c0_10], %6 {strides = array<i32>} : memref<1x256x128xf32, #tpu.memory_space<vmem>>, vector<1x256x128xf32>,
    return
  }
  func.func @transform_0(%arg0: i32, %arg1: i32) -> (i32, i32, i32) {
    %c0_i32 = arith.constant 0 : i32
    %c0_i32_0 = arith.constant 0 : i32
    return %arg0, %arg1, %c0_i32 : i32, i32, i32
  }
  func.func @transform_1(%arg0: i32, %arg1: i32) -> (i32, i32, i32) {
    %c0_i32 = arith.constant 0 : i32
    %c0_i32_0 = arith.constant 0 : i32
    %c0_i32_1 = arith.constant 0 : i32
    return %arg0, %c0_i32, %c0_i32_0 : i32, i32, i32
  }
  func.func @transform_2(%arg0: i32, %arg1: i32) -> (i32, i32, i32) {
    %c0_i32 = arith.constant 0 : i32
    %c0_i32_0 = arith.constant 0 : i32
    %c0_i32_1 = arith.constant 0 : i32
    return %arg0, %c0_i32, %c0_i32_0 : i32, i32, i32
  }
  func.func @transform_3(%arg0: i32, %arg1: i32) -> (i32, i32, i32) {
    %c0_i32 = arith.constant 0 : i32
    %c0_i32_0 = arith.constant 0 : i32
    return %arg0, %arg1, %c0_i32 : i32, i32, i32
  }
}

</mosaic_0001>

<bundles_post_ra>
// kernel: gau_forward.3
= control target key start
LH: loop header
LB: loop body
LE: loop exit
PB: predicated region body
PF: predicated region fallthrough
CT: control target
= control target key end

     0   :  { %s635_s27 = smov [#allocation3]   ;;  %s636_s28 = smov [#allocation4]   ;;  %s754_s0 = inlined_call_operand.vmem [shape: s32[16], index: 0, kind: input, shape index: {}]   ;;  %s755_s2 = inlined_call_operand.vmem [shape: f32[16], index: 2, kind: input, shape index: {}]   ;;  %s756_s3 = inlined_call_operand.vmem [shape: f32[2,8,8,128], index: 3, kind: input, shape index: {}, may-alias: {3,4}]   ;;  %s757_s4 = inlined_call_operand.vmem [shape: f32[2,8,8,128], index: 4, kind: input, shape index: {}, may-alias: {3,4}]   ;;  %s758_s5 = inlined_call_operand.vmem [shape: f32[16,8], index: 5, kind: input, shape index: {}]   ;;  %s759_s6 = inlined_call_operand.vmem [shape: bf16[2,16,16,128], index: 6, kind: output, shape index: {}]   ;;  %s760_s1 = inlined_call_operand.vmem [shape: s32[16], index: 1, kind: input, shape index: {}]  }
   0x1   :  { %s12_s23 = sshll.u32 %s754_s0, 4  ;;  %s17_s26 = sshll.u32 %s760_s1, 4  ;;  %s13_s23 = int_to_ptr.vmem [resolvable:$true] %s12_s23  ;;  %s18_s26 = int_to_ptr.vmem [resolvable:$true] %s17_s26 }
   0x2   :  { %15 = dma.vmem_to_smem %s13_s23, 16, %s635_s27, [#allocation2] }
   0x3   :  { %20 = dma.vmem_to_smem %s18_s26, 16, %s636_s28, [#allocation2] }
   0x4   :  { %609 = dma.done.wait [#allocation2], 32 }
   0x5   :  { %610 = vsyncadd [#allocation2], 4294967264 }
   0x6   :  { %23 = sfence }
   0x7   :  { %24 = vsyncpa [#allocation6], 0  ;;  %s679_s29 = smov 0   ;;  %s681_s30 = smov 0  }
   0x8   :  { %s683_s7 = smov 0   ;;  %s685_s0 = smov 0  }
   0x9   :  { %s687_s8 = smov 0  }
   0xa LB: > { %s473_s1 = sadd.s32 4294967295, %s633_s8   ;;  %s39_s9 = sadd.s32 1, %s625_s7  ;;  %s633_s8 = sphi %s687_s8, %s30_s8   ;;  %s629_s0 = sphi %s685_s0, %s764_s0   ;;  %s625_s7 = sphi %s683_s7, %s763_s7   ;;  %s621_s30 = sphi %s681_s30, %s762_s30   ;;  %s617_s29 = sphi %s679_s29, %s761_s29  }
   0xb   : > { %p40_p0 = scmp.ge.s32.totalorder %s39_s9, 16  ;;  %s42_s10 = sadd.s32 1, %s629_s0 }
   0xc   : > { %p475_p1 = scmp.ge.s32.totalorder %s633_s8, 1  ;;  %p177_p2 = scmp.lt.s32.totalorder %s633_s8, 33 }
   0xd   : > { %s766_s9 = smov (%p40_p0, %s39_s9), 0  ;;  %s768_s10 = smov (!%p40_p0, %s42_s10), %s629_s0 }
   0xe   : > { %p178_p3 = pnand %p475_p1, %p177_p2  ;;  %p44_p4 = scmp.ge.s32.totalorder %s768_s10, 2 }
   0xf   : > { %p505_p5 = scmp.eq.s32.totalorder %s473_s1, 0  ;;  %s189_s13 = sshll.u32 %s755_s2, 4  ;;  %s190_s13 = int_to_ptr.vmem [resolvable:$true] %s189_s13 }
  0x10   : > { %p501_p6 = pneg %p178_p3  ;;  %s770_s10 = smov (%p44_p4, %s768_s10), 0 }
  0x11   : > { %s637_s14 = smov [#allocation5]   ;;  %231 = sbr.rel (%p178_p3) target bundleno = 173 (0xad), region = 36 }
  0x12   : > { %p502_p7 = pnand %p505_p5, %p501_p6 }
  0x14   : > { %504 = dma.vmem_to_smem (!%p502_p7), %s190_s13, 16, %s637_s14, [#allocation6]  }
  0x16   : > { %612 = dma.done.wait (%p505_p5), [#allocation6], 16  }
  0x17   : > { %614 = vsyncadd (%p505_p5), [#allocation6], 4294967280 }
  0x18   : > { %238 = sfence }
  0x19   : > { %s276_s15 = sld [smem:[#allocation3 + %s617_s29]]  ;;  %p277_p8 = scmp.lt.s32.totalorder %s621_s30, 1  ;;  %v314_v7 = vld [vmem:[%s758_s5] sm:$0xff]  ;;  %vm316_vm0 = vcmask 64512   ;;  %v315_v8 = vld [vmem:[%s758_s5 + $0x8] sm:$0xff] }
  0x1a   : > { %s286_s16 = sld [smem:[#allocation4 + %s617_s29]]  ;;  %p298_p11 = scmp.lt.s32.totalorder %s617_s29, 15 }
  0x1b   : > { %s772_s30 = smov (!%p277_p8, %s621_s30), 1  ;;  %s305_s17 = sld [smem:[#allocation5 + %s617_s29]] }
  0x1c   : > { %s480_s18 = sshll.u32 %s772_s30, 3  ;;  %s778_s29 = smov (!%p298_p11, %s617_s29), 15 }
  0x1f   : > { %p279_p9 = scmp.lt.s32.totalorder %s276_s15, 7 }
  0x20   : > { %p289_p10 = scmp.lt.s32.totalorder %s286_s16, 7 }
  0x21   : > { %s774_s15 = smov (!%p279_p9, %s276_s15), 7  ;;  %s307_s20 = ssub.f32 1.0, %s305_s17  ;;  %v311_v1 = vstv %s305_s17 }
  0x22   : > { %s776_s16 = smov (!%p289_p10, %s286_s16), 7  ;;  %s282_s19 = sadd.s32 %s480_s18, %s774_s15 }
  0x23   : > { %s481_s21 = sshll.u32 %s282_s19, 3  ;;  %s292_s22 = sadd.s32 %s480_s18, %s776_s16  ;;  %v308_v0 = vstv %s307_s20 }
  0x24   : > { %s284_s25 = scalar_lea.vmem %s756_s3, %s481_s21  ;;  %s483_s26 = sshll.u32 %s292_s22, 3 }
  0x25   : > { %s294_s1 = scalar_lea.vmem %s757_s4, %s483_s26  ;;  %v306_v2 = vld [vmem:[%s284_s25] sm:$0xff]  ;;  %s484_s15 = sshll.u32 %s778_s29, 1 }
  0x26   : > { %v309_v3 = vmul.f32 %v308_v0, %v306_v2  ;;  %v310_v4 = vld [vmem:[%s294_s1] sm:$0xff]  ;;  %s485_s16 = sshll.u32 %s772_s30, 5 }
  0x27   : > { %v312_v5 = vmul.f32 %v311_v1, %v310_v4  ;;  %s302_s17 = sadd.s32 %s485_s16, %s484_s15 }
  0x28   : > { %s486_s18 = sshll.u32 %s302_s17, 2 }
  0x29   : > { %v313_v6 = vadd.f32 %v312_v5, %v309_v3  ;;  %s304_s21 = scalar_lea.vmem %s759_s6, %s486_s18 }
  0x2b   : > { %338 = vmatpush.msra.mxu0 %v313_v6  ;;  %496 = vmatpush.msra.mxu1 %v313_v6 }
  0x2c   : > { %487 = vmatmul.msk.f32.vlgmr.msra.gmra.mxu0 %vm316_vm0, %v314_v7  ;;  %488 = vmatmul.msk.f32.vlgmr.msra.gmra.mxu1 %vm316_vm0, %v315_v8 }
  0xa9   : > { %v340_v9 = vpop.f32.mrf.mxu0  ;;  %v343_v10 = vpop.f32.mrf.mxu1 }
  0xaa   : > { %v494_v11 = vpack.c.bf16 %v343_v10, %v340_v9 }
  0xac   : > { %495 = vst [vmem:[%s304_s21] sm:$0xff] %v494_v11  }
  0xad PF: > { %s30_s8 = sadd.s32 1, %s633_s8   ;;  %s761_s29 = smov %s625_s7 }
  0xae   : > { %p27_p12 = scmp.ge.s32.totalorder %s30_s8, 34   ;;  %s762_s30 = smov %s629_s0 }
  0xaf   : > { %s763_s7 = smov %s766_s9  ;;  %s764_s0 = smov %s770_s10 }
  0xb0   :  { %29 = sbr.rel (!%p27_p12) target bundleno = 10 (0xa), region = 74 }
  0xb5   :  { %379 = vsyncpa [#allocation6], 1 }
  0xb6   :  { %381 = vsyncpa [#allocation6 + $0x1], 1 }

// kernel: gau_forward.4
= control target key start
LH: loop header
LB: loop body
LE: loop exit
PB: predicated region body
PF: predicated region fallthrough
CT: control target
= control target key end

     0   :  { %s1698_s21 = smov 0   ;;  %s1700_s22 = smov 0   ;;  %s1968_s0 = inlined_call_operand.vmem [shape: bf16[2,256,128], index: 0, kind: input, shape index: {}]   ;;  %s1969_s1 = inlined_call_operand.vmem [shape: bf16[2,256,128], index: 1, kind: input, shape index: {}]   ;;  %s1970_s2 = inlined_call_operand.vmem [shape: bf16[128,128], index: 2, kind: input, shape index: {}]   ;;  %s1971_s3 = inlined_call_operand.vmem [shape: bf16[128,128], index: 3, kind: input, shape index: {}]   ;;  %s1972_s4 = inlined_call_operand.vmem [shape: f32[2,256,128], index: 4, kind: output, shape index: {0}]   ;;  %s1973_s5 = inlined_call_operand.vmem [shape: f32[2,1,128], index: 5, kind: output, shape index: {1}]   ;;  %s1974_s6 = inlined_call_operand.vmem [shape: f32[2,1,128], index: 6, kind: output, shape index: {2}]  }
   0x1   :  { %s1702_s23 = smov 0  }
   0x2 LB: > { %s36_s24 = sadd.s32 1, %s1656_s22  ;;  %p1345_p0 = scmp.ge.s32.totalorder %s1660_s23, 1  ;;  %s1660_s23 = sphi %s1702_s23, %s17_s23   ;;  %s1656_s22 = sphi %s1700_s22, %s1976_s22   ;;  %s1652_s21 = sphi %s1698_s21, %s1975_s21  }
   0x3   : > { %p38_p1 = scmp.ge.s32.totalorder %s36_s24, 2  ;;  %p286_p2 = scmp.lt.s32.totalorder %s1660_s23, 3 }
   0x5   : > { %s1978_s24 = smov (%p38_p1, %s36_s24), 0  ;;  %p287_p3 = pnand %p1345_p0, %p286_p2 }
   0x6   : > { %p357_p4 = scmp.lt.s32.totalorder (!%p287_p3), %s1652_s21, 1 }
   0x7   : > { %290 = sbr.rel (%p287_p3) target bundleno = 344 (0x158), region = 36 }
   0xc   : > { %v1596_v0 = vld [vmem:[%s1971_s3 + $0x38] sm:$0xff]  ;;  %v1595_v2 = vld [vmem:[%s1971_s3 + $0x30] sm:$0xff]  ;;  %v1594_v4 = vld [vmem:[%s1971_s3 + $0x28] sm:$0xff]  ;;  %s1980_s21 = smov (!%p357_p4, %s1652_s21), 1 }
   0xd   : > { %v1572_v1 = vld [vmem:[%s1970_s2 + $0x38] sm:$0xff]  ;;  %655 = vmatpush.bf16.msra.mxu0 %v1596_v0  ;;  %v1571_v3 = vld [vmem:[%s1970_s2 + $0x30] sm:$0xff]  ;;  %1597 = vmatpush.bf16.msra.mxu2 %v1596_v0  ;;  %v1570_v5 = vld [vmem:[%s1970_s2 + $0x28] sm:$0xff]  ;;  %s1546_s9 = sshll.u32 %s1980_s21, 7  ;;  %s1548_s20 = sshll.u32 %s1980_s21, 8 }
   0xe   : > { %888 = vmatpush.bf16.msra.mxu1 %v1572_v1  ;;  %1605 = vmatpush.bf16.msra.mxu3 %v1572_v1  ;;  %v1593_v6 = vld [vmem:[%s1971_s3 + $0x20] sm:$0xff]  ;;  %v1592_v8 = vld [vmem:[%s1971_s3 + $0x18] sm:$0xff]  ;;  %v1591_v10 = vld [vmem:[%s1971_s3 + $0x10] sm:$0xff]  ;;  %s1774_s16 = scalar_lea.vmem %s1969_s1, %s1546_s9  ;;  %s1779_s19 = scalar_lea.vmem %s1968_s0, %s1546_s9 }
   0xf   : > { %v1569_v7 = vld [vmem:[%s1970_s2 + $0x20] sm:$0xff]  ;;  %v1568_v9 = vld [vmem:[%s1970_s2 + $0x18] sm:$0xff]  ;;  %v1567_v11 = vld [vmem:[%s1970_s2 + $0x10] sm:$0xff]  ;;  %s1817_s27 = scalar_lea.vmem %s1972_s4, %s1548_s20  ;;  %s1900_s30 = scalar_lea.vmem %s1973_s5, %s1980_s21 }
  0x10   : > { %v1590_v12 = vld [vmem:[%s1971_s3 + $0x8] sm:$0xff]  ;;  %v1589_v14 = vld [vmem:[%s1971_s3] sm:$0xff]  ;;  %v1575_v24 = vld [vmem:[%s1774_s16 + $0x10] sm:$0xff]  ;;  %s1907_s9 = scalar_lea.vmem %s1974_s6, %s1980_s21 }
  0x11   : > { %656 = vmatpush.bf16.msra.mxu0 %v1595_v2  ;;  %1598 = vmatpush.bf16.msra.mxu2 %v1595_v2  ;;  %v1566_v13 = vld [vmem:[%s1970_s2 + $0x8] sm:$0xff]  ;;  %v1565_v15 = vld [vmem:[%s1970_s2] sm:$0xff]  ;;  %v1551_v25 = vld [vmem:[%s1779_s19 + $0x10] sm:$0xff] }
  0x12   : > { %889 = vmatpush.bf16.msra.mxu1 %v1571_v3  ;;  %1606 = vmatpush.bf16.msra.mxu3 %v1571_v3  ;;  %v1573_v16 = vld [vmem:[%s1774_s16] sm:$0xff]  ;;  %v1574_v20 = vld [vmem:[%s1774_s16 + $0x8] sm:$0xff]  ;;  %v1583_v26 = vld [vmem:[%s1774_s16 + $0x50] sm:$0xff] }
  0x13   : > { %v1549_v17 = vld [vmem:[%s1779_s19] sm:$0xff]  ;;  %v1550_v21 = vld [vmem:[%s1779_s19 + $0x8] sm:$0xff]  ;;  %v1559_v27 = vld [vmem:[%s1779_s19 + $0x50] sm:$0xff] }
  0x14   : > { %v1581_v18 = vld [vmem:[%s1774_s16 + $0x40] sm:$0xff]  ;;  %v1582_v22 = vld [vmem:[%s1774_s16 + $0x48] sm:$0xff]  ;;  %v1576_v28 = vld [vmem:[%s1774_s16 + $0x18] sm:$0xff] }
  0x15   : > { %657 = vmatpush.bf16.msra.mxu0 %v1594_v4  ;;  %1599 = vmatpush.bf16.msra.mxu2 %v1594_v4  ;;  %v1557_v19 = vld [vmem:[%s1779_s19 + $0x40] sm:$0xff]  ;;  %v1558_v23 = vld [vmem:[%s1779_s19 + $0x48] sm:$0xff]  ;;  %v1552_v29 = vld [vmem:[%s1779_s19 + $0x18] sm:$0xff] }
  0x16   : > { %890 = vmatpush.bf16.msra.mxu1 %v1570_v5  ;;  %1607 = vmatpush.bf16.msra.mxu3 %v1570_v5  ;;  %v1584_v30 = vld [vmem:[%s1774_s16 + $0x58] sm:$0xff]  ;;  %v1577_v32 = vld [vmem:[%s1774_s16 + $0x20] sm:$0xff]  ;;  %v1578_v36 = vld [vmem:[%s1774_s16 + $0x28] sm:$0xff] }
  0x17   : > { %v1560_v31 = vld [vmem:[%s1779_s19 + $0x58] sm:$0xff]  ;;  %v1553_v33 = vld [vmem:[%s1779_s19 + $0x20] sm:$0xff]  ;;  %v1554_v37 = vld [vmem:[%s1779_s19 + $0x28] sm:$0xff] }
  0x18   : > { %v1585_v34 = vld [vmem:[%s1774_s16 + $0x60] sm:$0xff]  ;;  %v1586_v38 = vld [vmem:[%s1774_s16 + $0x68] sm:$0xff]  ;;  %v1579_v40 = vld [vmem:[%s1774_s16 + $0x30] sm:$0xff] }
  0x19   : > { %658 = vmatpush.bf16.msra.mxu0 %v1593_v6  ;;  %1600 = vmatpush.bf16.msra.mxu2 %v1593_v6  ;;  %v1561_v35 = vld [vmem:[%s1779_s19 + $0x60] sm:$0xff]  ;;  %v1562_v39 = vld [vmem:[%s1779_s19 + $0x68] sm:$0xff]  ;;  %v1555_v41 = vld [vmem:[%s1779_s19 + $0x30] sm:$0xff] }
  0x1a   : > { %891 = vmatpush.bf16.msra.mxu1 %v1569_v7  ;;  %1608 = vmatpush.bf16.msra.mxu3 %v1569_v7  ;;  %v1587_v42 = vld [vmem:[%s1774_s16 + $0x70] sm:$0xff]  ;;  %v1580_v44 = vld [vmem:[%s1774_s16 + $0x38] sm:$0xff] }
  0x1b   : > { %v1563_v43 = vld [vmem:[%s1779_s19 + $0x70] sm:$0xff]  ;;  %v1556_v45 = vld [vmem:[%s1779_s19 + $0x38] sm:$0xff] }
  0x1c   : > { %v1588_v46 = vld [vmem:[%s1774_s16 + $0x78] sm:$0xff] }
  0x1d   : > { %659 = vmatpush.bf16.msra.mxu0 %v1592_v8  ;;  %1601 = vmatpush.bf16.msra.mxu2 %v1592_v8  ;;  %v1564_v47 = vld [vmem:[%s1779_s19 + $0x78] sm:$0xff] }
  0x1e   : > { %892 = vmatpush.bf16.msra.mxu1 %v1568_v9  ;;  %1609 = vmatpush.bf16.msra.mxu3 %v1568_v9 }
  0x21   : > { %660 = vmatpush.bf16.msra.mxu0 %v1591_v10  ;;  %1602 = vmatpush.bf16.msra.mxu2 %v1591_v10 }
  0x22   : > { %893 = vmatpush.bf16.msra.mxu1 %v1567_v11  ;;  %1610 = vmatpush.bf16.msra.mxu3 %v1567_v11 }
  0x25   : > { %661 = vmatpush.bf16.msra.mxu0 %v1590_v12  ;;  %1603 = vmatpush.bf16.msra.mxu2 %v1590_v12 }
  0x26   : > { %894 = vmatpush.bf16.msra.mxu1 %v1566_v13  ;;  %1611 = vmatpush.bf16.msra.mxu3 %v1566_v13 }
  0x29   : > { %662 = vmatpush.bf16.msra.mxu0 %v1589_v14  ;;  %1604 = vmatpush.bf16.msra.mxu2 %v1589_v14 }
  0x2a   : > { %895 = vmatpush.bf16.msra.mxu1 %v1565_v15  ;;  %1612 = vmatpush.bf16.msra.mxu3 %v1565_v15 }
  0x2c   : > { %663 = vmatmul.bf16.vlgmr.msra.gmra.mxu0 %v1573_v16  ;;  %703 = vmatmul.bf16.vlgmr.msra.gmra.mxu2 %v1581_v18 }
  0x2d   : > { %896 = vmatmul.bf16.vlgmr.msra.gmra.mxu1 %v1549_v17  ;;  %936 = vmatmul.bf16.vlgmr.msra.gmra.mxu3 %v1557_v19 }
  0x3c   : > { %668 = vmatmul.bf16.gmra.mxu0 %v1574_v20  ;;  %708 = vmatmul.bf16.gmra.mxu2 %v1582_v22 }
  0x3d   : > { %901 = vmatmul.bf16.gmra.mxu1 %v1550_v21  ;;  %941 = vmatmul.bf16.gmra.mxu3 %v1558_v23 }
  0x4c   : > { %673 = vmatmul.bf16.gmra.mxu0 %v1575_v24  ;;  %713 = vmatmul.bf16.gmra.mxu2 %v1583_v26 }
  0x4d   : > { %906 = vmatmul.bf16.gmra.mxu1 %v1551_v25  ;;  %946 = vmatmul.bf16.gmra.mxu3 %v1559_v27 }
  0x5c   : > { %678 = vmatmul.bf16.gmra.mxu0 %v1576_v28  ;;  %718 = vmatmul.bf16.gmra.mxu2 %v1584_v30 }
  0x5d   : > { %911 = vmatmul.bf16.gmra.mxu1 %v1552_v29  ;;  %951 = vmatmul.bf16.gmra.mxu3 %v1560_v31 }
  0x6c   : > { %683 = vmatmul.bf16.gmra.mxu0 %v1577_v32  ;;  %723 = vmatmul.bf16.gmra.mxu2 %v1585_v34 }
  0x6d   : > { %916 = vmatmul.bf16.gmra.mxu1 %v1553_v33  ;;  %956 = vmatmul.bf16.gmra.mxu3 %v1561_v35 }
  0x7c   : > { %688 = vmatmul.bf16.gmra.mxu0 %v1578_v36  ;;  %728 = vmatmul.bf16.gmra.mxu2 %v1586_v38 }
  0x7d   : > { %921 = vmatmul.bf16.gmra.mxu1 %v1554_v37  ;;  %961 = vmatmul.bf16.gmra.mxu3 %v1562_v39 }
  0x8c   : > { %693 = vmatmul.bf16.gmra.mxu0 %v1579_v40  ;;  %733 = vmatmul.bf16.gmra.mxu2 %v1587_v42 }
  0x8d   : > { %926 = vmatmul.bf16.gmra.mxu1 %v1555_v41  ;;  %966 = vmatmul.bf16.gmra.mxu3 %v1563_v43 }
  0x9c   : > { %698 = vmatmul.bf16.gmra.mxu0 %v1580_v44  ;;  %738 = vmatmul.bf16.gmra.mxu2 %v1588_v46 }
  0x9d   : > { %931 = vmatmul.bf16.gmra.mxu1 %v1556_v45  ;;  %971 = vmatmul.bf16.gmra.mxu3 %v1564_v47 }
  0xa9   : > { %v664_v48 = vpop.f32.mrf.mxu0 }
  0xaa   : > { %v897_v49 = vpop.f32.mrf.mxu1 }
  0xab   : > { %v898_v50 = vadd.f32 %v897_v49, %v664_v48 }
  0xad   : > { %977 = vst [vmem:[%s1817_s27] sm:$0xff] %v898_v50  ;;  %v1050_v57 = vmul.f32 %v898_v50, %v898_v50 }
  0xaf   : > { %v704_v51 = vpop.f32.mrf.mxu2 }
  0xb0   : > { %v937_v52 = vpop.f32.mrf.mxu3 }
  0xb1   : > { %v666_v53 = vpop.f32.mrf.mxu0  ;;  %v1820_v55 = vadd.f32 %v937_v52, %v704_v51 }
  0xb2   : > { %v899_v54 = vpop.f32.mrf.mxu1 }
  0xb3   : > { %v900_v56 = vadd.f32 %v899_v54, %v666_v53  ;;  %993 = vst [vmem:[%s1817_s27 + $0x80] sm:$0xff] %v1820_v55 }
  0xb5   : > { %978 = vst [vmem:[%s1817_s27 + $0x8] sm:$0xff] %v900_v56  ;;  %v1010_v58 = vadd.f32 %v900_v56, %v898_v50  ;;  %v1051_v59 = vmul.f32 %v900_v56, %v900_v56 }
  0xb7   : > { %v1082_v60 = vadd.f32 %v1051_v59, %v1050_v57  ;;  %v706_v61 = vpop.f32.mrf.mxu2 }
  0xb8   : > { %v939_v62 = vpop.f32.mrf.mxu3 }
  0xb9   : > { %v669_v63 = vpop.f32.mrf.mxu0  ;;  %v1825_v1 = vadd.f32 %v939_v62, %v706_v61 }
  0xba   : > { %v902_v0 = vpop.f32.mrf.mxu1 }
  0xbb   : > { %v903_v2 = vadd.f32 %v902_v0, %v669_v63  ;;  %994 = vst [vmem:[%s1817_s27 + $0x88] sm:$0xff] %v1825_v1 }
  0xbd   : > { %979 = vst [vmem:[%s1817_s27 + $0x10] sm:$0xff] %v903_v2  ;;  %v1011_v3 = vadd.f32 %v1010_v58, %v903_v2  ;;  %v1052_v4 = vmul.f32 %v903_v2, %v903_v2 }
  0xbf   : > { %v1083_v5 = vadd.f32 %v1082_v60, %v1052_v4  ;;  %v709_v6 = vpop.f32.mrf.mxu2 }
  0xc0   : > { %v942_v7 = vpop.f32.mrf.mxu3 }
  0xc1   : > { %v671_v8 = vpop.f32.mrf.mxu0  ;;  %v1830_v10 = vadd.f32 %v942_v7, %v709_v6 }
  0xc2   : > { %v904_v9 = vpop.f32.mrf.mxu1 }
  0xc3   : > { %v905_v11 = vadd.f32 %v904_v9, %v671_v8  ;;  %995 = vst [vmem:[%s1817_s27 + $0x90] sm:$0xff] %v1830_v10 }
  0xc5   : > { %980 = vst [vmem:[%s1817_s27 + $0x18] sm:$0xff] %v905_v11  ;;  %v1012_v12 = vadd.f32 %v1011_v3, %v905_v11  ;;  %v1053_v13 = vmul.f32 %v905_v11, %v905_v11 }
  0xc7   : > { %v1084_v14 = vadd.f32 %v1083_v5, %v1053_v13  ;;  %v711_v15 = vpop.f32.mrf.mxu2 }
  0xc8   : > { %v944_v16 = vpop.f32.mrf.mxu3 }
  0xc9   : > { %v674_v17 = vpop.f32.mrf.mxu0  ;;  %v1835_v19 = vadd.f32 %v944_v16, %v711_v15 }
  0xca   : > { %v907_v18 = vpop.f32.mrf.mxu1 }
  0xcb   : > { %v908_v20 = vadd.f32 %v907_v18, %v674_v17  ;;  %996 = vst [vmem:[%s1817_s27 + $0x98] sm:$0xff] %v1835_v19 }
  0xcd   : > { %981 = vst [vmem:[%s1817_s27 + $0x20] sm:$0xff] %v908_v20  ;;  %v1840_v21 = vadd.f32 %v1012_v12, %v908_v20  ;;  %v1054_v22 = vmul.f32 %v908_v20, %v908_v20 }
  0xcf   : > { %v1842_v23 = vadd.f32 %v1084_v14, %v1054_v22  ;;  %v714_v24 = vpop.f32.mrf.mxu2 }
  0xd0   : > { %v947_v25 = vpop.f32.mrf.mxu3 }
  0xd1   : > { %v676_v26 = vpop.f32.mrf.mxu0  ;;  %v1844_v28 = vadd.f32 %v947_v25, %v714_v24 }
  0xd2   : > { %v909_v27 = vpop.f32.mrf.mxu1 }
  0xd3   : > { %v910_v29 = vadd.f32 %v909_v27, %v676_v26  ;;  %997 = vst [vmem:[%s1817_s27 + $0xa0] sm:$0xff] %v1844_v28 }
  0xd5   : > { %982 = vst [vmem:[%s1817_s27 + $0x28] sm:$0xff] %v910_v29  ;;  %v1055_v11 = vmul.f32 %v910_v29, %v910_v29  ;;  %v1014_v12 = vadd.f32 %v1840_v21, %v910_v29 }
  0xd7   : > { %v716_v30 = vpop.f32.mrf.mxu2  ;;  %v1086_v20 = vadd.f32 %v1842_v23, %v1055_v11 }
  0xd8   : > { %v949_v31 = vpop.f32.mrf.mxu3 }
  0xd9   : > { %v679_v32 = vpop.f32.mrf.mxu0  ;;  %v1849_v34 = vadd.f32 %v949_v31, %v716_v30 }
  0xda   : > { %v912_v33 = vpop.f32.mrf.mxu1 }
  0xdb   : > { %v913_v35 = vadd.f32 %v912_v33, %v679_v32  ;;  %998 = vst [vmem:[%s1817_s27 + $0xa8] sm:$0xff] %v1849_v34 }
  0xdd   : > { %983 = vst [vmem:[%s1817_s27 + $0x30] sm:$0xff] %v913_v35  ;;  %v1056_v13 = vmul.f32 %v913_v35, %v913_v35  ;;  %v1015_v22 = vadd.f32 %v1014_v12, %v913_v35 }
  0xdf   : > { %v719_v36 = vpop.f32.mrf.mxu2  ;;  %v1087_v26 = vadd.f32 %v1086_v20, %v1056_v13  ;;  %v1067_v13 = vmul.f32 %v1825_v1, %v1825_v1 }
  0xe0   : > { %v952_v37 = vpop.f32.mrf.mxu3 }
  0xe1   : > { %v681_v38 = vpop.f32.mrf.mxu0  ;;  %v1854_v40 = vadd.f32 %v952_v37, %v719_v36 }
  0xe2   : > { %v914_v39 = vpop.f32.mrf.mxu1 }
  0xe3   : > { %v915_v41 = vadd.f32 %v914_v39, %v681_v38  ;;  %999 = vst [vmem:[%s1817_s27 + $0xb0] sm:$0xff] %v1854_v40 }
  0xe5   : > { %984 = vst [vmem:[%s1817_s27 + $0x38] sm:$0xff] %v915_v41  ;;  %v1057_v24 = vmul.f32 %v915_v41, %v915_v41  ;;  %v1016_v27 = vadd.f32 %v1015_v22, %v915_v41  ;;  %v1068_v22 = vmul.f32 %v1830_v10, %v1830_v10 }
  0xe7   : > { %v721_v42 = vpop.f32.mrf.mxu2  ;;  %v1088_v21 = vadd.f32 %v1087_v26, %v1057_v24 }
  0xe8   : > { %v954_v43 = vpop.f32.mrf.mxu3 }
  0xe9   : > { %v684_v44 = vpop.f32.mrf.mxu0  ;;  %v1859_v46 = vadd.f32 %v954_v43, %v721_v42 }
  0xea   : > { %v917_v45 = vpop.f32.mrf.mxu1 }
  0xeb   : > { %v918_v47 = vadd.f32 %v917_v45, %v684_v44  ;;  %1000 = vst [vmem:[%s1817_s27 + $0xb8] sm:$0xff] %v1859_v46 }
  0xed   : > { %985 = vst [vmem:[%s1817_s27 + $0x40] sm:$0xff] %v918_v47  ;;  %v1058_v30 = vmul.f32 %v918_v47, %v918_v47  ;;  %v1017_v29 = vadd.f32 %v1016_v27, %v918_v47 }
  0xef   : > { %v724_v48 = vpop.f32.mrf.mxu2  ;;  %v1089_v32 = vadd.f32 %v1088_v21, %v1058_v30 }
  0xf0   : > { %v957_v49 = vpop.f32.mrf.mxu3 }
  0xf1   : > { %v686_v50 = vpop.f32.mrf.mxu0  ;;  %v1864_v52 = vadd.f32 %v957_v49, %v724_v48 }
  0xf2   : > { %v919_v51 = vpop.f32.mrf.mxu1 }
  0xf3   : > { %v920_v53 = vadd.f32 %v919_v51, %v686_v50  ;;  %1001 = vst [vmem:[%s1817_s27 + $0xc0] sm:$0xff] %v1864_v52 }
  0xf5   : > { %986 = vst [vmem:[%s1817_s27 + $0x48] sm:$0xff] %v920_v53  ;;  %v1059_v31 = vmul.f32 %v920_v53, %v920_v53  ;;  %v1018_v33 = vadd.f32 %v1017_v29, %v920_v53  ;;  %v1071_v29 = vmul.f32 %v1849_v34, %v1849_v34 }
  0xf7   : > { %v726_v54 = vpop.f32.mrf.mxu2  ;;  %v1090_v42 = vadd.f32 %v1089_v32, %v1059_v31  ;;  %v1072_v32 = vmul.f32 %v1854_v40, %v1854_v40 }
  0xf8   : > { %v959_v56 = vpop.f32.mrf.mxu3 }
  0xf9   : > { %v689_v57 = vpop.f32.mrf.mxu0  ;;  %v1869_v59 = vadd.f32 %v959_v56, %v726_v54 }
  0xfa   : > { %v922_v58 = vpop.f32.mrf.mxu1 }
  0xfb   : > { %v923_v60 = vadd.f32 %v922_v58, %v689_v57  ;;  %1002 = vst [vmem:[%s1817_s27 + $0xc8] sm:$0xff] %v1869_v59 }
  0xfd   : > { %987 = vst [vmem:[%s1817_s27 + $0x50] sm:$0xff] %v923_v60  ;;  %v1060_v36 = vmul.f32 %v923_v60, %v923_v60  ;;  %v1019_v43 = vadd.f32 %v1018_v33, %v923_v60 }
  0xff   : > { %v729_v61 = vpop.f32.mrf.mxu2  ;;  %v1091_v45 = vadd.f32 %v1090_v42, %v1060_v36 }
 0x100   : > { %v962_v62 = vpop.f32.mrf.mxu3 }
 0x101   : > { %v691_v63 = vpop.f32.mrf.mxu0  ;;  %v1874_v2 = vadd.f32 %v962_v62, %v729_v61 }
 0x102   : > { %v924_v0 = vpop.f32.mrf.mxu1 }
 0x103   : > { %v925_v3 = vadd.f32 %v924_v0, %v691_v63  ;;  %1003 = vst [vmem:[%s1817_s27 + $0xd0] sm:$0xff] %v1874_v2 }
 0x105   : > { %988 = vst [vmem:[%s1817_s27 + $0x58] sm:$0xff] %v925_v3  ;;  %v1061_v44 = vmul.f32 %v925_v3, %v925_v3  ;;  %v1020_v48 = vadd.f32 %v1019_v43, %v925_v3 }
 0x107   : > { %v731_v4 = vpop.f32.mrf.mxu2  ;;  %v1092_v49 = vadd.f32 %v1091_v45, %v1061_v44 }
 0x108   : > { %v964_v5 = vpop.f32.mrf.mxu3 }
 0x109   : > { %v694_v6 = vpop.f32.mrf.mxu0  ;;  %v1879_v8 = vadd.f32 %v964_v5, %v731_v4 }
 0x10a   : > { %v927_v7 = vpop.f32.mrf.mxu1 }
 0x10b   : > { %v928_v9 = vadd.f32 %v927_v7, %v694_v6  ;;  %1004 = vst [vmem:[%s1817_s27 + $0xd8] sm:$0xff] %v1879_v8  ;;  %v1662_v7 = vmov 0.0  }
 0x10c   : > { %413 = vst [vmem:[%s1900_s30] sm:$0x1] %v1662_v7 }
 0x10d   : > { %989 = vst [vmem:[%s1817_s27 + $0x60] sm:$0xff] %v928_v9  ;;  %v1062_v47 = vmul.f32 %v928_v9, %v928_v9  ;;  %v1021_v50 = vadd.f32 %v1020_v48, %v928_v9  ;;  %v1066_v9 = vmul.f32 %v1820_v55, %v1820_v55 }
 0x10e   : > { %414 = vst [vmem:[%s1907_s9] sm:$0x1] %v1662_v7 }
 0x10f   : > { %v734_v14 = vpop.f32.mrf.mxu2  ;;  %v1093_v53 = vadd.f32 %v1092_v49, %v1062_v47 }
 0x110   : > { %v967_v15 = vpop.f32.mrf.mxu3 }
 0x111   : > { %v696_v16 = vpop.f32.mrf.mxu0  ;;  %v1885_v18 = vadd.f32 %v967_v15, %v734_v14 }
 0x112   : > { %v929_v17 = vpop.f32.mrf.mxu1 }
 0x113   : > { %v930_v25 = vadd.f32 %v929_v17, %v696_v16  ;;  %1005 = vst [vmem:[%s1817_s27 + $0xe0] sm:$0xff] %v1885_v18  ;;  %v1078_v47 = vmul.f32 %v1885_v18, %v1885_v18 }
 0x115   : > { %990 = vst [vmem:[%s1817_s27 + $0x68] sm:$0xff] %v930_v25  ;;  %v1063_v51 = vmul.f32 %v930_v25, %v930_v25  ;;  %v1022_v54 = vadd.f32 %v1021_v50, %v930_v25 }
 0x117   : > { %v736_v37 = vpop.f32.mrf.mxu2  ;;  %v1094_v63 = vadd.f32 %v1093_v53, %v1063_v51 }
 0x118   : > { %v969_v38 = vpop.f32.mrf.mxu3 }
 0x119   : > { %v699_v23 = vpop.f32.mrf.mxu0  ;;  %v1891_v39 = vadd.f32 %v969_v38, %v736_v37 }
 0x11a   : > { %v932_v35 = vpop.f32.mrf.mxu1 }
 0x11b   : > { %v933_v41 = vadd.f32 %v932_v35, %v699_v23  ;;  %1006 = vst [vmem:[%s1817_s27 + $0xe8] sm:$0xff] %v1891_v39  ;;  %v1079_v51 = vmul.f32 %v1891_v39, %v1891_v39 }
 0x11d   : > { %991 = vst [vmem:[%s1817_s27 + $0x70] sm:$0xff] %v933_v41  ;;  %v1064_v56 = vmul.f32 %v933_v41, %v933_v41  ;;  %v1023_v0 = vadd.f32 %v1022_v54, %v933_v41 }
 0x11f   : > { %v739_v57 = vpop.f32.mrf.mxu2  ;;  %v1095_v4 = vadd.f32 %v1094_v63, %v1064_v56 }
 0x120   : > { %v972_v58 = vpop.f32.mrf.mxu3 }
 0x121   : > { %v701_v60 = vpop.f32.mrf.mxu0  ;;  %v973_v62 = vadd.f32 %v972_v58, %v739_v57 }
 0x122   : > { %v934_v61 = vpop.f32.mrf.mxu1 }
 0x123   : > { %v935_v3 = vadd.f32 %v934_v61, %v701_v60  ;;  %1007 = vst [vmem:[%s1817_s27 + $0xf0] sm:$0xff] %v973_v62  ;;  %v1080_v54 = vmul.f32 %v973_v62, %v973_v62 }
 0x125   : > { %992 = vst [vmem:[%s1817_s27 + $0x78] sm:$0xff] %v935_v3  ;;  %v1024_v5 = vadd.f32 %v1023_v0, %v935_v3  ;;  %v1065_v6 = vmul.f32 %v935_v3, %v935_v3 }
 0x127   : > { %v1025_v11 = vadd.f32 %v1024_v5, %v1820_v55  ;;  %v1096_v12 = vadd.f32 %v1095_v4, %v1065_v6  ;;  %v741_v16 = vpop.f32.mrf.mxu2  ;;  %v1069_v55 = vmul.f32 %v1835_v19, %v1835_v19  ;;  %v1009_v6 = vld [vmem:[%s1900_s30] sm:$0x1] }
 0x128   : > { %v974_v17 = vpop.f32.mrf.mxu3 }
 0x129   : > { %v1026_v14 = vadd.f32 %v1025_v11, %v1825_v1  ;;  %v1097_v15 = vadd.f32 %v1096_v12, %v1066_v9  ;;  %v975_v20 = vadd.f32 %v974_v17, %v741_v16  ;;  %v1070_v1 = vmul.f32 %v1844_v28, %v1844_v28 }
 0x12b   : > { %v1027_v24 = vadd.f32 %v1026_v14, %v1830_v10  ;;  %v1098_v25 = vadd.f32 %v1097_v15, %v1067_v13  ;;  %1008 = vst [vmem:[%s1817_s27 + $0xf8] sm:$0xff] %v975_v20  ;;  %v1081_v57 = vmul.f32 %v975_v20, %v975_v20 }
 0x12d   : > { %v1028_v26 = vadd.f32 %v1027_v24, %v1835_v19  ;;  %v1099_v27 = vadd.f32 %v1098_v25, %v1068_v22  ;;  %v1073_v19 = vmul.f32 %v1859_v46, %v1859_v46 }
 0x12f   : > { %v1029_v30 = vadd.f32 %v1028_v26, %v1844_v28  ;;  %v1100_v21 = vadd.f32 %v1099_v27, %v1069_v55  ;;  %v1074_v28 = vmul.f32 %v1864_v52, %v1864_v52 }
 0x131   : > { %v1030_v31 = vadd.f32 %v1029_v30, %v1849_v34  ;;  %v1101_v10 = vadd.f32 %v1100_v21, %v1070_v1  ;;  %v1075_v34 = vmul.f32 %v1869_v59, %v1869_v59 }
 0x133   : > { %v1102_v33 = vadd.f32 %v1101_v10, %v1071_v29  ;;  %v1031_v36 = vadd.f32 %v1030_v31, %v1854_v40  ;;  %v1076_v40 = vmul.f32 %v1874_v2, %v1874_v2 }
 0x135   : > { %v1032_v37 = vadd.f32 %v1031_v36, %v1859_v46  ;;  %v1103_v38 = vadd.f32 %v1102_v33, %v1072_v32  ;;  %v1077_v46 = vmul.f32 %v1879_v8, %v1879_v8 }
 0x137   : > { %v1033_v23 = vadd.f32 %v1032_v37, %v1864_v52  ;;  %v1104_v35 = vadd.f32 %v1103_v38, %v1073_v19 }
 0x139   : > { %v1034_v42 = vadd.f32 %v1033_v23, %v1869_v59  ;;  %v1105_v43 = vadd.f32 %v1104_v35, %v1074_v28 }
 0x13b   : > { %v1035_v44 = vadd.f32 %v1034_v42, %v1874_v2  ;;  %v1106_v41 = vadd.f32 %v1105_v43, %v1075_v34 }
 0x13d   : > { %v1036_v45 = vadd.f32 %v1035_v44, %v1879_v8  ;;  %v1107_v48 = vadd.f32 %v1106_v41, %v1076_v40 }
 0x13f   : > { %v1037_v52 = vadd.f32 %v1036_v45, %v1885_v18  ;;  %v1108_v49 = vadd.f32 %v1107_v48, %v1077_v46 }
 0x141   : > { %v1109_v59 = vadd.f32 %v1108_v49, %v1078_v47  ;;  %v1038_v50 = vadd.f32 %v1037_v52, %v1891_v39 }
 0x143   : > { %v1110_v2 = vadd.f32 %v1109_v59, %v1079_v51  ;;  %v1039_v53 = vadd.f32 %v1038_v50, %v973_v62  ;;  %v1049_v62 = vld [vmem:[%s1907_s9] sm:$0x1] }
 0x145   : > { %v1111_v56 = vadd.f32 %v1110_v2, %v1080_v54  ;;  %v1040_v8 = vadd.f32 %v1039_v53, %v975_v20 }
 0x147   : > { %v1041_v58 = vrot.slane %v1040_v8, 4  ;;  %v1112_v60 = vadd.f32 %v1111_v56, %v1081_v57 }
 0x149   : > { %v1042_v61 = vadd.f32 %v1041_v58, %v1040_v8  ;;  %v1113_v18 = vrot.slane %v1112_v60, 4 }
 0x14b   : > { %v1043_v63 = vrot.slane %v1042_v61, 2  ;;  %v1114_v0 = vadd.f32 %v1113_v18, %v1112_v60 }
 0x14d   : > { %v1044_v3 = vadd.f32 %v1043_v63, %v1042_v61  ;;  %v1115_v4 = vrot.slane %v1114_v0, 2 }
 0x14f   : > { %v1045_v5 = vrot.slane %v1044_v3, 1  ;;  %v1116_v39 = vadd.f32 %v1115_v4, %v1114_v0 }
 0x151   : > { %v1046_v7 = vadd.f32 %v1045_v5, %v1044_v3  ;;  %v1117_v9 = vrot.slane %v1116_v39, 1 }
 0x153   : > { %v1047_v11 = vadd.f32 %v1046_v7, %v1009_v6  ;;  %v1118_v12 = vadd.f32 %v1117_v9, %v1116_v39 }
 0x155   : > { %1048 = vst [vmem:[%s1900_s30] sm:$0x1] %v1047_v11  ;;  %v1119_v13 = vadd.f32 %v1118_v12, %v1049_v62 }
 0x157   : > { %1120 = vst [vmem:[%s1907_s9] sm:$0x1] %v1119_v13 }
 0x158 PF: > { %s17_s23 = sadd.s32 1, %s1660_s23   ;;  %s1975_s21 = smov %s1656_s22 }
 0x159   : > { %p14_p5 = scmp.ge.s32.totalorder %s17_s23, 4   ;;  %s1976_s22 = smov %s1978_s24 }
 0x15b   :  { %16 = sbr.rel (!%p14_p5) target bundleno = 2 (0x2), region = 103 }

// kernel: gau_forward.5
= control target key start
LH: loop header
LB: loop body
LE: loop exit
PB: predicated region body
PF: predicated region fallthrough
CT: control target
= control target key end

     0   :  { %8 = vsyncpa [#allocation3], 0  ;;  %s902_s0 = inlined_call_operand.vmem [shape: f32[2,256,128], index: 0, kind: input, shape index: {}]   ;;  %s903_s1 = inlined_call_operand.vmem [shape: f32[2,1,128], index: 1, kind: input, shape index: {}]   ;;  %s904_s2 = inlined_call_operand.vmem [shape: f32[2,1,128], index: 2, kind: input, shape index: {}]   ;;  %s905_s3 = inlined_call_operand.hbm [shape: f32[2,256,128], index: 3, kind: output, shape index: {}]  }
   0x1   :  { %10 = vsyncpa [#allocation3 + $0x1], 0  ;;  %s655_s12 = smov 0   ;;  %s657_s13 = smov 0  }
   0x2   :  { %s659_s14 = smov 0   ;;  %s661_s15 = smov 0  }
   0x3   :  { %s663_s16 = smov 0   ;;  %s665_s17 = smov 0  }
   0x4 LB: > { %s479_s18 = sadd.s32 4294967295, %s631_s17   ;;  %s480_s19 = sadd.s32 4294967294, %s631_s17   ;;  %s631_s17 = sphi %s665_s17, %s16_s17   ;;  %s627_s16 = sphi %s663_s16, %s912_s16   ;;  %s623_s15 = sphi %s661_s15, %s911_s15   ;;  %s619_s14 = sphi %s659_s14, %s910_s14   ;;  %s615_s13 = sphi %s657_s13, %s909_s13   ;;  %s611_s12 = sphi %s655_s12, %s908_s12  }
   0x5   : > { %s28_s20 = sadd.s32 1, %s627_s16  ;;  %s117_s21 = sadd.s32 1, %s619_s14 }
   0x6   : > { %p30_p0 = scmp.ge.s32.totalorder %s28_s20, 2  ;;  %p127_p1 = scmp.ne.s32.totalorder %s619_s14, %s615_s13 }
   0x7   : > { %p128_p2 = scmp.eq.s32.totalorder %s479_s18, 1  ;;  %p133_p3 = scmp.ne.s32.totalorder %s615_s13, %s611_s12 }
   0x8   : > { %s914_s20 = smov (%p30_p0, %s28_s20), 0  ;;  %p134_p5 = scmp.eq.s32.totalorder %s480_s19, 1 }
   0x9   : > { %p695_p4 = por %p128_p2, %p127_p1  ;;  %s112_s23 = ssub.s32 %s627_s16, %s914_s20 }
   0xa   : > { %p483_p6 = scmp.ge.s32.totalorder %s631_s17, 1  ;;  %p115_p7 = scmp.eq.s32.totalorder %s112_s23, 0 }
   0xb   : > { %p702_p8 = por %p134_p5, %p133_p3  ;;  %p177_p9 = scmp.lt.s32.totalorder %s631_s17, 3 }
   0xc   : > { %s708_s25 = scalar_select %p115_p7, %s619_s14, %s117_s21  }
   0xd   : > { %p178_p10 = pnand %p483_p6, %p177_p9 }
   0xe   : > { %p212_p11 = scmp.lt.s32.totalorder (!%p178_p10), %s623_s15, 1  ;;  %s208_s26 = sand.u32 (!%p178_p10), 1, %s615_s13  }
   0xf   : > { %181 = sbr.rel (%p178_p10) target bundleno = 64 (0x40), region = 32  ;;  %s715_s28 = sshll.u32 (!%p178_p10), %s208_s26, 8 }
  0x10   : > { %s756_s18 = scalar_lea.vmem (!%p178_p10), [#allocation2], %s715_s28  ;;  %s493_s19 = sshll.u32 (!%p178_p10), %s623_s15, 8 }
  0x11   : > { %s378_s23 = scalar_lea.hbm (!%p178_p10), %s905_s3, %s493_s19  ;;  %s573_s7 = scalar_lea.hbm (!%p178_p10), %s905_s3, 512 }
  0x12   : > { %s381_s28 = sshll.u32 (!%p178_p10), %s378_s23, 4  ;;  %s382_s28 = int_to_ptr.hbm [resolvable:$true] %s381_s28 }
  0x13   : > { %s567_s30 = sshra.s32 (!%p178_p10), %s382_s28, 4  ;;  %s568_s30 = int_to_ptr.hbm [resolvable:$true] %s567_s30 }
  0x14   : > { %s213_s27 = scalar_select %p212_p11, %s623_s15, 1 }
  0x15   : > { %s569_s4 = scalar_lea.hbm %s568_s30, 256  ;;  %p574_p1 = scmp.lt.s32.totalorder %s568_s30, %s905_s3 }
  0x16   : > { %s492_s29 = sshll.u32 %s213_s27, 8  ;;  %s223_s5 = scalar_lea.vmem %s903_s1, %s213_s27 }
  0x17   : > { %s723_s8 = scalar_lea.vmem %s902_s0, %s492_s29  ;;  %s226_s11 = scalar_lea.vmem %s904_s2, %s213_s27  ;;  %v728_v0 = vld [vmem:[%s223_s5] ss:$0 sm:$0xff] }
  0x18   : > { %v228_v1 = vld [vmem:[%s723_s8] sm:$0xff]  ;;  %v229_v4 = vld [vmem:[%s723_s8 + $0x8] sm:$0xff]  ;;  %v230_v5 = vld [vmem:[%s723_s8 + $0x10] sm:$0xff]  ;;  %s379_s27 = sshll.u32 %s756_s18, 4  ;;  %s365_s29 = scalar_lea.sflag [#allocation3], %s208_s26  ;;  %s380_s27 = int_to_ptr.vmem [resolvable:$true] %s379_s27 }
  0x19   : > { %v731_v2 = vld [vmem:[%s226_s11] ss:$0 sm:$0xff]  ;;  %v264_v3 = vmul.f32 %v728_v0, %v228_v1  ;;  %v231_v6 = vld [vmem:[%s723_s8 + $0x18] sm:$0xff]  ;;  %v265_v7 = vmul.f32 %v728_v0, %v229_v4  ;;  %v266_v8 = vmul.f32 %v728_v0, %v230_v5  ;;  %v233_v11 = vld [vmem:[%s723_s8 + $0x28] sm:$0xff]  ;;  %p570_p12 = scmp.ne.s32.totalorder %s568_s30, %s569_s4  ;;  %p575_p2 = scmp.lt.s32.totalorder %s573_s7, %s569_s4 }
  0x1a   : > { %v267_v9 = vmul.f32 %v728_v0, %v231_v6  ;;  %v232_v10 = vld [vmem:[%s723_s8 + $0x20] sm:$0xff]  ;;  %v234_v12 = vld [vmem:[%s723_s8 + $0x30] sm:$0xff]  ;;  %v269_v15 = vmul.f32 %v728_v0, %v233_v11  ;;  %v235_v17 = vld [vmem:[%s723_s8 + $0x38] sm:$0xff] }
  0x1b   : > { %v300_v13 = vadd.f32 %v731_v2, %v264_v3  ;;  %v268_v14 = vmul.f32 %v728_v0, %v232_v10  ;;  %v270_v16 = vmul.f32 %v728_v0, %v234_v12  ;;  %v236_v18 = vld [vmem:[%s723_s8 + $0x40] sm:$0xff]  ;;  %v237_v19 = vld [vmem:[%s723_s8 + $0x48] sm:$0xff]  ;;  %v301_v20 = vadd.f32 %v731_v2, %v265_v7  ;;  %v238_v24 = vld [vmem:[%s723_s8 + $0x50] sm:$0xff]  ;;  %p571_p13 = pnand %p570_p12, %p695_p4  ;;  %p576_p3 = por %p575_p2, %p574_p1 }
  0x1c   : > { %v302_v21 = vadd.f32 %v731_v2, %v266_v8  ;;  %v303_v22 = vadd.f32 %v731_v2, %v267_v9  ;;  %v271_v23 = vmul.f32 %v728_v0, %v235_v17  ;;  %v272_v26 = vmul.f32 %v728_v0, %v236_v18  ;;  %v239_v27 = vld [vmem:[%s723_s8 + $0x58] sm:$0xff]  ;;  %v240_v30 = vld [vmem:[%s723_s8 + $0x60] sm:$0xff]  ;;  %v241_v33 = vld [vmem:[%s723_s8 + $0x68] sm:$0xff] }
  0x1d   : > { %332 = vst [vmem:[%s756_s18] sm:$0xff] %v300_v13  ;;  %v304_v25 = vadd.f32 %v731_v2, %v268_v14  ;;  %v305_v28 = vadd.f32 %v731_v2, %v269_v15  ;;  %v273_v29 = vmul.f32 %v728_v0, %v237_v19  ;;  %v306_v31 = vadd.f32 %v731_v2, %v270_v16  ;;  %v242_v36 = vld [vmem:[%s723_s8 + $0x70] sm:$0xff]  ;;  %v243_v39 = vld [vmem:[%s723_s8 + $0x78] sm:$0xff]  ;;  %v244_v42 = vld [vmem:[%s723_s8 + $0x80] sm:$0xff]  ;;  %p572_p0 = pneg %p571_p13 }
  0x1e   : > { %333 = vst [vmem:[%s756_s18 + $0x8] sm:$0xff] %v301_v20  ;;  %v274_v32 = vmul.f32 %v728_v0, %v238_v24  ;;  %v307_v34 = vadd.f32 %v731_v2, %v271_v23  ;;  %v275_v35 = vmul.f32 %v728_v0, %v239_v27  ;;  %v308_v37 = vadd.f32 %v731_v2, %v272_v26  ;;  %v245_v45 = vld [vmem:[%s723_s8 + $0x88] sm:$0xff]  ;;  %v246_v48 = vld [vmem:[%s723_s8 + $0x90] sm:$0xff]  ;;  %v247_v51 = vld [vmem:[%s723_s8 + $0x98] sm:$0xff] }
  0x1f   : > { %334 = vst [vmem:[%s756_s18 + $0x10] sm:$0xff] %v302_v21  ;;  %v276_v38 = vmul.f32 %v728_v0, %v240_v30  ;;  %v309_v40 = vadd.f32 %v731_v2, %v273_v29  ;;  %v277_v41 = vmul.f32 %v728_v0, %v241_v33  ;;  %v278_v44 = vmul.f32 %v728_v0, %v242_v36  ;;  %v248_v54 = vld [vmem:[%s723_s8 + $0xa0] sm:$0xff]  ;;  %v249_v57 = vld [vmem:[%s723_s8 + $0xa8] sm:$0xff]  ;;  %v250_v60 = vld [vmem:[%s723_s8 + $0xb0] sm:$0xff]  ;;  %p577_p5 = pnand %p576_p3, %p572_p0 }
  0x20   : > { %335 = vst [vmem:[%s756_s18 + $0x18] sm:$0xff] %v303_v22  ;;  %v310_v43 = vadd.f32 %v731_v2, %v274_v32  ;;  %v311_v46 = vadd.f32 %v731_v2, %v275_v35  ;;  %v279_v47 = vmul.f32 %v728_v0, %v243_v39  ;;  %v280_v50 = vmul.f32 %v728_v0, %v244_v42  ;;  %v251_v63 = vld [vmem:[%s723_s8 + $0xb8] sm:$0xff]  ;;  %v252_v4 = vld [vmem:[%s723_s8 + $0xc0] sm:$0xff]  ;;  %v253_v7 = vld [vmem:[%s723_s8 + $0xc8] sm:$0xff] }
  0x21   : > { %336 = vst [vmem:[%s756_s18 + $0x20] sm:$0xff] %v304_v25  ;;  %v312_v49 = vadd.f32 %v731_v2, %v276_v38  ;;  %v313_v52 = vadd.f32 %v731_v2, %v277_v41  ;;  %v281_v53 = vmul.f32 %v728_v0, %v245_v45  ;;  %v314_v55 = vadd.f32 %v731_v2, %v278_v44  ;;  %v254_v10 = vld [vmem:[%s723_s8 + $0xd0] sm:$0xff]  ;;  %v255_v13 = vld [vmem:[%s723_s8 + $0xd8] sm:$0xff]  ;;  %v256_v16 = vld [vmem:[%s723_s8 + $0xe0] sm:$0xff] }
  0x22   : > { %337 = vst [vmem:[%s756_s18 + $0x28] sm:$0xff] %v305_v28  ;;  %v282_v56 = vmul.f32 %v728_v0, %v246_v48  ;;  %v315_v58 = vadd.f32 %v731_v2, %v279_v47  ;;  %v283_v59 = vmul.f32 %v728_v0, %v247_v51  ;;  %v316_v61 = vadd.f32 %v731_v2, %v280_v50  ;;  %v257_v19 = vld [vmem:[%s723_s8 + $0xe8] sm:$0xff]  ;;  %v258_v22 = vld [vmem:[%s723_s8 + $0xf0] sm:$0xff]  ;;  %v259_v25 = vld [vmem:[%s723_s8 + $0xf8] sm:$0xff] }
  0x23   : > { %338 = vst [vmem:[%s756_s18 + $0x30] sm:$0xff] %v306_v31  ;;  %v284_v62 = vmul.f32 %v728_v0, %v248_v54  ;;  %v317_v1 = vadd.f32 %v731_v2, %v281_v53  ;;  %v285_v3 = vmul.f32 %v728_v0, %v249_v57  ;;  %v286_v6 = vmul.f32 %v728_v0, %v250_v60 }
  0x24   : > { %339 = vst [vmem:[%s756_s18 + $0x38] sm:$0xff] %v307_v34  ;;  %v318_v5 = vadd.f32 %v731_v2, %v282_v56  ;;  %v319_v8 = vadd.f32 %v731_v2, %v283_v59  ;;  %v287_v9 = vmul.f32 %v728_v0, %v251_v63  ;;  %v288_v12 = vmul.f32 %v728_v0, %v252_v4 }
  0x25   : > { %340 = vst [vmem:[%s756_s18 + $0x40] sm:$0xff] %v308_v37  ;;  %v320_v11 = vadd.f32 %v731_v2, %v284_v62  ;;  %v321_v14 = vadd.f32 %v731_v2, %v285_v3  ;;  %v289_v15 = vmul.f32 %v728_v0, %v253_v7  ;;  %v322_v17 = vadd.f32 %v731_v2, %v286_v6 }
  0x26   : > { %341 = vst [vmem:[%s756_s18 + $0x48] sm:$0xff] %v309_v40  ;;  %v290_v18 = vmul.f32 %v728_v0, %v254_v10  ;;  %v323_v20 = vadd.f32 %v731_v2, %v287_v9  ;;  %v291_v21 = vmul.f32 %v728_v0, %v255_v13  ;;  %v324_v23 = vadd.f32 %v731_v2, %v288_v12 }
  0x27   : > { %342 = vst [vmem:[%s756_s18 + $0x50] sm:$0xff] %v310_v43  ;;  %v292_v24 = vmul.f32 %v728_v0, %v256_v16  ;;  %v325_v26 = vadd.f32 %v731_v2, %v289_v15  ;;  %v293_v27 = vmul.f32 %v728_v0, %v257_v19  ;;  %v294_v29 = vmul.f32 %v728_v0, %v258_v22 }
  0x28   : > { %343 = vst [vmem:[%s756_s18 + $0x58] sm:$0xff] %v311_v46  ;;  %v326_v28 = vadd.f32 %v731_v2, %v290_v18  ;;  %v327_v30 = vadd.f32 %v731_v2, %v291_v21  ;;  %v295_v31 = vmul.f32 %v728_v0, %v259_v25 }
  0x29   : > { %344 = vst [vmem:[%s756_s18 + $0x60] sm:$0xff] %v312_v49  ;;  %v328_v32 = vadd.f32 %v731_v2, %v292_v24  ;;  %v329_v33 = vadd.f32 %v731_v2, %v293_v27  ;;  %v330_v34 = vadd.f32 %v731_v2, %v294_v29 }
  0x2a   : > { %345 = vst [vmem:[%s756_s18 + $0x68] sm:$0xff] %v313_v52  ;;  %v331_v35 = vadd.f32 %v731_v2, %v295_v31 }
  0x2b   : > { %346 = vst [vmem:[%s756_s18 + $0x70] sm:$0xff] %v314_v55 }
  0x2c   : > { %347 = vst [vmem:[%s756_s18 + $0x78] sm:$0xff] %v315_v58 }
  0x2d   : > { %348 = vst [vmem:[%s756_s18 + $0x80] sm:$0xff] %v316_v61 }
  0x2e   : > { %349 = vst [vmem:[%s756_s18 + $0x88] sm:$0xff] %v317_v1 }
  0x2f   : > { %350 = vst [vmem:[%s756_s18 + $0x90] sm:$0xff] %v318_v5 }
  0x30   : > { %351 = vst [vmem:[%s756_s18 + $0x98] sm:$0xff] %v319_v8 }
  0x31   : > { %352 = vst [vmem:[%s756_s18 + $0xa0] sm:$0xff] %v320_v11 }
  0x32   : > { %353 = vst [vmem:[%s756_s18 + $0xa8] sm:$0xff] %v321_v14 }
  0x33   : > { %354 = vst [vmem:[%s756_s18 + $0xb0] sm:$0xff] %v322_v17 }
  0x34   : > { %355 = vst [vmem:[%s756_s18 + $0xb8] sm:$0xff] %v323_v20 }
  0x35   : > { %356 = vst [vmem:[%s756_s18 + $0xc0] sm:$0xff] %v324_v23 }
  0x36   : > { %357 = vst [vmem:[%s756_s18 + $0xc8] sm:$0xff] %v325_v26 }
  0x37   : > { %358 = vst [vmem:[%s756_s18 + $0xd0] sm:$0xff] %v326_v28 }
  0x38   : > { %359 = vst [vmem:[%s756_s18 + $0xd8] sm:$0xff] %v327_v30 }
  0x39   : > { %360 = vst [vmem:[%s756_s18 + $0xe0] sm:$0xff] %v328_v32 }
  0x3a   : > { %361 = vst [vmem:[%s756_s18 + $0xe8] sm:$0xff] %v329_v33 }
  0x3b   : > { %362 = vst [vmem:[%s756_s18 + $0xf0] sm:$0xff] %v330_v34 }
  0x3c   : > { %363 = vst [vmem:[%s756_s18 + $0xf8] sm:$0xff] %v331_v35 }
  0x3d   : > { %580 = shalt.err (!%p577_p5)
}
  0x3e   : > { %s633_s26 = smov 128   ;;  %s634_s10 = smov 8  }
  0x3f   : > { %494 = dma.vmem_to_hbm [thread:$0]  (%p695_p4), %s380_s27, 4096, %s382_s28, %s365_s29, %s633_s26, %s633_s26, %s634_s10  }
  0x40 PF: > { %p500_p6 = scmp.ge.s32.totalorder %s631_s17, 2  ;;  %s396_s11 = sand.u32 1, %s611_s12  }
  0x41   : > { %s397_s18 = scalar_lea.sflag [#allocation3], %s396_s11 }
  0x42   : > { %p497_p7 = pnand %p500_p6, %p702_p8 }
  0x44   : > { %p498_p9 = pneg %p497_p7 }
  0x46   : > { %606 = dma.done.wait (%p498_p9), %s397_s18, 4096  }
  0x47   : > { %608 = vsyncadd (%p498_p9), %s397_s18, 4294963200  ;;  %s16_s17 = sadd.s32 1, %s631_s17   ;;  %s908_s12 = smov %s615_s13 }
  0x48   : > { %p13_p10 = scmp.ge.s32.totalorder %s16_s17, 4   ;;  %s909_s13 = smov %s619_s14 }
  0x49   : > { %s910_s14 = smov %s708_s25  ;;  %s911_s15 = smov %s627_s16 }
  0x4a   : > { %s912_s16 = smov %s914_s20  ;;  %15 = sbr.rel (!%p13_p10) target bundleno = 4 (0x4), region = 73 }
  0x4f   :  { %403 = vsyncpa [#allocation3], 1 }
  0x50   :  { %405 = vsyncpa [#allocation3 + $0x1], 1 }

</bundles_post_ra>
